<compile_context>
chip_gen: v7x
topology: tpu7x:2x2x1
jax: 0.10.0
libtpu: 0.0.40
codegen_flags: <defaults>
</compile_context>

<pallas_src>
import jax
import jax.numpy as jnp
from jax.experimental import pallas as pl
from jax.experimental.pallas import tpu as pltpu


_NEG_SLOPE = 0.2
_BN_EPS = 0.8
_VMEM_LIMIT = 32 * 1024 * 1024


# ---------------------------------------------------------------------------
# Fused Pallas kernel: all 4 conv blocks + Linear + Sigmoid, one image per step
# ---------------------------------------------------------------------------

def _discriminator_kernel(img_ref,
                          w1_ref, s1_ref, e1_ref,
                          w2_ref, s2_ref, e2_ref,
                          w3_ref, s3_ref, e3_ref,
                          w4_ref, s4_ref, e4_ref,
                          wfc_ref, bfc_ref,
                          out_ref):
    """One image per grid step.  Activation layout: (rows=H, lanes=W*C), f32."""

    def conv_block(x, w_ref, s_ref, e_ref):
        # x:      (H_in, W_in*Cin)
        # w_ref:  (3, W_in*Cin, OW*Cout)  block-structured conv weight per kh
        # s_ref:  (3, OH, H_in)           0/1 stride-2 row-selection (pad folded in)
        # e_ref:  (3, OW*Cout)            [conv bias; BN scale; BN shift]
        y = None
        for kh in range(3):
            rows = jnp.dot(s_ref[kh], x, preferred_element_type=jnp.float32)
            part = jnp.dot(rows, w_ref[kh], preferred_element_type=jnp.float32)
            y = part if y is None else y + part
        e = e_ref[...]
        y = y + e[0:1, :]                                  # conv bias
        y = jnp.where(y >= 0.0, y, _NEG_SLOPE * y)         # LeakyReLU(0.2)
        # Dropout2d(0.25): identity in eval mode.
        return y * e[1:2, :] + e[2:3, :]                   # folded eval BatchNorm

    x = img_ref[0].astype(jnp.float32)                     # (H, W*Cin)
    x = conv_block(x, w1_ref, s1_ref, e1_ref)
    x = conv_block(x, w2_ref, s2_ref, e2_ref)
    x = conv_block(x, w3_ref, s3_ref, e3_ref)
    x = conv_block(x, w4_ref, s4_ref, e4_ref)              # (ds, ds*128)

    # Linear(128*ds*ds, 1) + Sigmoid, all f32: VPU multiply + reductions.
    z = jnp.sum(x * wfc_ref[...], axis=1, keepdims=True)   # (ds, 1)   lane reduce
    z = jnp.sum(z, axis=0, keepdims=True) + bfc_ref[...]   # (1, 1)    sublane reduce
    out_ref[...] = jax.nn.sigmoid(z).reshape(1, 1, 1)


# ---------------------------------------------------------------------------
# Wrapper-side parameter preparation (tiny, done once per traced call)
# ---------------------------------------------------------------------------

def _prep_conv_layer(w_oihw, bias, bn, h_in, w_in, c_in):
    """Build block weight, row-selection matrices and epilogue for one layer."""
    f32 = jnp.float32
    c_out = w_oihw.shape[0]
    oh = (h_in + 2 - 3) // 2 + 1
    ow = (w_in + 2 - 3) // 2 + 1

    # Block-structured weight: W[kh, wi*Cin+ci, ow*Cout+co] = w[kh, kw, ci, co]
    # where kw = wi - 2*ow + 1 (stride 2, pad 1 folded in; out-of-range -> 0).
    w_hwio = jnp.transpose(w_oihw, (2, 3, 1, 0)).astype(f32)     # (kh, kw, ci, co)
    wi = jnp.arange(w_in)
    owi = jnp.arange(ow)
    kwi = jnp.arange(3)
    sel = (wi[None, :, None] ==
           2 * owi[None, None, :] + kwi[:, None, None] - 1).astype(f32)   # (kw, wi, ow)
    w_big = jnp.einsum("jio,hjcd->hicod", sel, w_hwio)
    w_big = w_big.reshape(3, w_in * c_in, ow * c_out)

    # Stride-2 row selection with top padding folded in:
    # S[kh, oh, i] = 1 iff i == 2*oh + kh - 1 (rows outside [0, h_in) are padding).
    ohi = jnp.arange(oh)
    hi = jnp.arange(h_in)
    khi = jnp.arange(3)
    s_mat = (hi[None, None, :] ==
             2 * ohi[None, :, None] + khi[:, None, None] - 1).astype(f32)  # (3, oh, h_in)

    # Epilogue: [conv bias; BN scale; BN shift], each tiled to the (ow*Cout) lanes.
    if bn is None:
        scale = jnp.ones((c_out,), f32)
        shift = jnp.zeros((c_out,), f32)
    else:
        gamma, beta, mean, var = (a.astype(f32) for a in bn)
        scale = gamma * jax.lax.rsqrt(var + _BN_EPS)
        shift = beta - mean * scale
    epi = jnp.stack([jnp.tile(bias.astype(f32), ow),
                     jnp.tile(scale, ow),
                     jnp.tile(shift, ow)], axis=0)                 # (3, ow*c_out)

    return w_big, s_mat, epi, (oh, ow, c_out)


# ---------------------------------------------------------------------------
# Full Discriminator forward (single fused pallas_call)
# ---------------------------------------------------------------------------

def discriminator_forward(img_nchw, params):
    """img_nchw: (N, C, H, W) float32 -> validity (N, 1) float32."""
    n, c, h, w = img_nchw.shape
    # NCHW -> per-image (H, W*C) row-major layout (only XLA op on activations).
    x = jnp.transpose(img_nchw, (0, 2, 3, 1)).reshape(n, h, w * c).astype(jnp.float32)

    layer_params = [
        (params["w1"], params["b1"], None),
        (params["w2"], params["b2"], params["bn2"]),
        (params["w3"], params["b3"], params["bn3"]),
        (params["w4"], params["b4"], params["bn4"]),
    ]

    inputs = [x]
    in_specs = [pl.BlockSpec((1, h, w * c), lambda i: (i, 0, 0))]

    ch, cw, cc = h, w, c
    for (wl, bl, bn) in layer_params:
        w_big, s_mat, epi, (ch, cw, cc) = _prep_conv_layer(wl, bl, bn, ch, cw, cc)
        inputs += [w_big, s_mat, epi]
        in_specs += [
            pl.BlockSpec(w_big.shape, lambda i: (0, 0, 0)),
            pl.BlockSpec(s_mat.shape, lambda i: (0, 0, 0)),
            pl.BlockSpec(epi.shape, lambda i: (0, 0)),
        ]

    # FC weight: PyTorch flattens (C, H, W); our features are laid out (H, W*C).
    w_fc = params["w_adv"].astype(jnp.float32).reshape(cc, ch, cw)
    w_fc = jnp.transpose(w_fc, (1, 2, 0)).reshape(ch, cw * cc)     # (ds, ds*128)
    b_fc = params["b_adv"].astype(jnp.float32).reshape(1, 1)
    inputs += [w_fc, b_fc]
    in_specs += [pl.BlockSpec(w_fc.shape, lambda i: (0, 0)),
                 pl.BlockSpec(b_fc.shape, lambda i: (0, 0))]

    out = pl.pallas_call(
        _discriminator_kernel,
        out_shape=jax.ShapeDtypeStruct((n, 1, 1), jnp.float32),
        grid=(n,),
        in_specs=in_specs,
        out_specs=pl.BlockSpec((1, 1, 1), lambda i: (i, 0, 0)),
        compiler_params=pltpu.CompilerParams(
            dimension_semantics=("parallel",),
            vmem_limit_bytes=_VMEM_LIMIT),
    )(*inputs)
    return out.reshape(n, 1)


# ---------------------------------------------------------------------------
# Pure-JAX reference (f32) for a correctness check
# ---------------------------------------------------------------------------

def _reference_forward(img_nchw, params, eps=_BN_EPS):
    def block(x, w, b, bn):
        y = jax.lax.conv_general_dilated(
            x, jnp.transpose(w, (2, 3, 1, 0)),
            window_strides=(2, 2), padding=((1, 1), (1, 1)),
            dimension_numbers=("NHWC", "HWIO", "NHWC"))
        y = y + b.reshape(1, 1, 1, -1)
        y = jnp.where(y >= 0.0, y, _NEG_SLOPE * y)
        if bn is not None:
            g, bt, mu, var = bn
            y = (y - mu) * jax.lax.rsqrt(var + eps) * g + bt
        return y

    x = jnp.transpose(img_nchw, (0, 2, 3, 1))
    x = block(x, params["w1"], params["b1"], None)
    x = block(x, params["w2"], params["b2"], params["bn2"])
    x = block(x, params["w3"], params["b3"], params["bn3"])
    x = block(x, params["w4"], params["b4"], params["bn4"])
    n = x.shape[0]
    flat = jnp.transpose(x, (0, 3, 1, 2)).reshape(n, -1)        # (C,H,W) order
    logit = flat @ params["w_adv"].T + params["b_adv"]
    return jax.nn.sigmoid(logit)


# ---------------------------------------------------------------------------
# Deterministic parameter construction
# ---------------------------------------------------------------------------

def make_params(key, img_shape):
    c_in, h, _ = img_shape
    ds = h // (2 ** 4)
    feat = 128 * ds * ds
    ks = jax.random.split(key, 20)
    ki = iter(range(20))

    def conv_w(k, cout, cin):
        return 0.05 * jax.random.normal(k, (cout, cin, 3, 3), jnp.float32)

    def bn_params(k, c):
        k1, k2, k3, k4 = jax.random.split(k, 4)
        gamma = 1.0 + 0.1 * jax.random.normal(k1, (c,), jnp.float32)
        beta = 0.1 * jax.random.normal(k2, (c,), jnp.float32)
        mean = 0.05 * jax.random.normal(k3, (c,), jnp.float32)
        var = 1.0 + 0.1 * jnp.abs(jax.random.normal(k4, (c,), jnp.float32))
        return (gamma, beta, mean, var)

    params = {
        "w1": conv_w(ks[next(ki)], 16, c_in),
        "b1": 0.05 * jax.random.normal(ks[next(ki)], (16,), jnp.float32),
        "w2": conv_w(ks[next(ki)], 32, 16),
        "b2": 0.05 * jax.random.normal(ks[next(ki)], (32,), jnp.float32),
        "bn2": bn_params(ks[next(ki)], 32),
        "w3": conv_w(ks[next(ki)], 64, 32),
        "b3": 0.05 * jax.random.normal(ks[next(ki)], (64,), jnp.float32),
        "bn3": bn_params(ks[next(ki)], 64),
        "w4": conv_w(ks[next(ki)], 128, 64),
        "b4": 0.05 * jax.random.normal(ks[next(ki)], (128,), jnp.float32),
        "bn4": bn_params(ks[next(ki)], 128),
        "w_adv": 0.05 * jax.random.normal(ks[next(ki)], (1, feat), jnp.float32),
        "b_adv": 0.05 * jax.random.normal(ks[next(ki)], (1,), jnp.float32),
    }
    return params


if __name__ == "__main__":
    img_shape = (4, 16, 16)      # (C, H, W); ds_size = 16 // 16 = 1
    batch = 2

    key = jax.random.PRNGKey(0)
    k_img, k_par = jax.random.split(key)
    img = jax.random.normal(k_img, (batch,) + img_shape, jnp.float32)
    params = make_params(k_par, img_shape)

    validity = jax.jit(discriminator_forward)(img, params)
    validity = jax.block_until_ready(validity)

    assert validity.shape == (batch, 1)
    assert bool(jnp.all((validity >= 0.0) & (validity <= 1.0)))

    ref = _reference_forward(img, params)
    assert bool(jnp.allclose(validity, ref, atol=1e-2, rtol=1e-2)), (validity, ref)

    print("KERNEL_OK")
</pallas_src>

<mosaic_0001>
module attributes {stable_mosaic.version = 11 : i64} {
  func.func @_discriminator_kernel(%arg0: i32, %arg1: memref<1x16x64xf32, #tpu.memory_space<vmem>>, %arg2: memref<3x64x128xf32, #tpu.memory_space<vmem>>, %arg3: memref<3x8x16xf32, #tpu.memory_space<vmem>>, %arg4: memref<3x128xf32, #tpu.memory_space<vmem>>, %arg5: memref<3x128x128xf32, #tpu.memory_space<vmem>>, %arg6: memref<3x4x8xf32, #tpu.memory_space<vmem>>, %arg7: memref<3x128xf32, #tpu.memory_space<vmem>>, %arg8: memref<3x128x128xf32, #tpu.memory_space<vmem>>, %arg9: memref<3x2x4xf32, #tpu.memory_space<vmem>>, %arg10: memref<3x128xf32, #tpu.memory_space<vmem>>, %arg11: memref<3x128x128xf32, #tpu.memory_space<vmem>>, %arg12: memref<3x1x2xf32, #tpu.memory_space<vmem>>, %arg13: memref<3x128xf32, #tpu.memory_space<vmem>>, %arg14: memref<1x128xf32, #tpu.memory_space<vmem>>, %arg15: memref<1x1xf32, #tpu.memory_space<vmem>>, %arg16: memref<1x1x1xf32, #tpu.memory_space<vmem>>) attributes {dimension_semantics = [#tpu.dimension_semantics<parallel>], iteration_bounds = array<i64: 2>, scalar_prefetch = 0 : i64, scratch_operands = 0 : i64, tpu.core_type = #tpu.core_type<tc>, window_params = [{transform_indices = @transform_0, window_bounds = array<i64: 1, 16, 64>}, {pipeline_mode = #tpu.pipeline_mode<synchronous>, transform_indices = @transform_1, window_bounds = array<i64: 3, 64, 128>}, {pipeline_mode = #tpu.pipeline_mode<synchronous>, transform_indices = @transform_2, window_bounds = array<i64: 3, 8, 16>}, {pipeline_mode = #tpu.pipeline_mode<synchronous>, transform_indices = @transform_3, window_bounds = array<i64: 3, 128>}, {pipeline_mode = #tpu.pipeline_mode<synchronous>, transform_indices = @transform_4, window_bounds = array<i64: 3, 128, 128>}, {pipeline_mode = #tpu.pipeline_mode<synchronous>, transform_indices = @transform_5, window_bounds = array<i64: 3, 4, 8>}, {pipeline_mode = #tpu.pipeline_mode<synchronous>, transform_indices = @transform_6, window_bounds = array<i64: 3, 128>}, {pipeline_mode = #tpu.pipeline_mode<synchronous>, transform_indices = @transform_7, window_bounds = array<i64: 3, 128, 128>}, {pipeline_mode = #tpu.pipeline_mode<synchronous>, transform_indices = @transform_8, window_bounds = array<i64: 3, 2, 4>}, {pipeline_mode = #tpu.pipeline_mode<synchronous>, transform_indices = @transform_9, window_bounds = array<i64: 3, 128>}, {pipeline_mode = #tpu.pipeline_mode<synchronous>, transform_indices = @transform_10, window_bounds = array<i64: 3, 128, 128>}, {pipeline_mode = #tpu.pipeline_mode<synchronous>, transform_indices = @transform_11, window_bounds = array<i64: 3, 1, 2>}, {pipeline_mode = #tpu.pipeline_mode<synchronous>, transform_indices = @transform_12, window_bounds = array<i64: 3, 128>}, {pipeline_mode = #tpu.pipeline_mode<synchronous>, transform_indices = @transform_13, window_bounds = array<i64: 1, 128>}, {pipeline_mode = #tpu.pipeline_mode<synchronous>, transform_indices = @transform_14, window_bounds = array<i64: 1, 1>}, {transform_indices = @transform_15, window_bounds = array<i64: 1, 1, 1>}]} {
    %c0 = arith.constant 0 : index
    %c0_0 = arith.constant 0 : index
    %c0_1 = arith.constant 0 : index
    %0 = vector.load %arg1[%c0, %c0_0, %c0_1] : memref<1x16x64xf32, #tpu.memory_space<vmem>>, vector<1x16x64xf32>
    %1 = vector.shape_cast %0 : vector<1x16x64xf32> to vector<16x64xf32>
    %c0_2 = arith.constant 0 : index
    %c0_3 = arith.constant 0 : index
    %c0_4 = arith.constant 0 : index
    %2 = vector.load %arg3[%c0_2, %c0_3, %c0_4] : memref<3x8x16xf32, #tpu.memory_space<vmem>>, vector<1x8x16xf32>
    %3 = vector.shape_cast %2 : vector<1x8x16xf32> to vector<8x16xf32>
    %cst = arith.constant dense<0.000000e+00> : vector<8x64xf32>
    %4 = tpu.matmul %3, %1, %cst {dimension_numbers = #tpu.dot_dimension_numbers<[1], [0], [0], [1], [0, 0, 1, 1], [], []>} : vector<8x16xf32>, vector<16x64xf32>, vector<8x64xf32> -> vector<8x64xf32>
    %c0_5 = arith.constant 0 : index
    %c0_6 = arith.constant 0 : index
    %c0_7 = arith.constant 0 : index
    %5 = vector.load %arg2[%c0_5, %c0_6, %c0_7] : memref<3x64x128xf32, #tpu.memory_space<vmem>>, vector<1x64x128xf32>
    %6 = vector.shape_cast %5 : vector<1x64x128xf32> to vector<64x128xf32>
    %cst_8 = arith.constant dense<0.000000e+00> : vector<8x128xf32>
    %7 = tpu.matmul %4, %6, %cst_8 {dimension_numbers = #tpu.dot_dimension_numbers<[1], [0], [0], [1], [0, 0, 1, 1], [], []>} : vector<8x64xf32>, vector<64x128xf32>, vector<8x128xf32> -> vector<8x128xf32>
    %c1 = arith.constant 1 : index
    %c0_9 = arith.constant 0 : index
    %c0_10 = arith.constant 0 : index
    %8 = vector.load %arg3[%c1, %c0_9, %c0_10] : memref<3x8x16xf32, #tpu.memory_space<vmem>>, vector<1x8x16xf32>
    %9 = vector.shape_cast %8 : vector<1x8x16xf32> to vector<8x16xf32>
    %cst_11 = arith.constant dense<0.000000e+00> : vector<8x64xf32>
    %10 = tpu.matmul %9, %1, %cst_11 {dimension_numbers = #tpu.dot_dimension_numbers<[1], [0], [0], [1], [0, 0, 1, 1], [], []>} : vector<8x16xf32>, vector<16x64xf32>, vector<8x64xf32> -> vector<8x64xf32>
    %c1_12 = arith.constant 1 : index
    %c0_13 = arith.constant 0 : index
    %c0_14 = arith.constant 0 : index
    %11 = vector.load %arg2[%c1_12, %c0_13, %c0_14] : memref<3x64x128xf32, #tpu.memory_space<vmem>>, vector<1x64x128xf32>
    %12 = vector.shape_cast %11 : vector<1x64x128xf32> to vector<64x128xf32>
    %cst_15 = arith.constant dense<0.000000e+00> : vector<8x128xf32>
    %13 = tpu.matmul %10, %12, %cst_15 {dimension_numbers = #tpu.dot_dimension_numbers<[1], [0], [0], [1], [0, 0, 1, 1], [], []>} : vector<8x64xf32>, vector<64x128xf32>, vector<8x128xf32> -> vector<8x128xf32>
    %14 = arith.addf %7, %13 : vector<8x128xf32>
    %c2 = arith.constant 2 : index
    %c0_16 = arith.constant 0 : index
    %c0_17 = arith.constant 0 : index
    %15 = vector.load %arg3[%c2, %c0_16, %c0_17] : memref<3x8x16xf32, #tpu.memory_space<vmem>>, vector<1x8x16xf32>
    %16 = vector.shape_cast %15 : vector<1x8x16xf32> to vector<8x16xf32>
    %cst_18 = arith.constant dense<0.000000e+00> : vector<8x64xf32>
    %17 = tpu.matmul %16, %1, %cst_18 {dimension_numbers = #tpu.dot_dimension_numbers<[1], [0], [0], [1], [0, 0, 1, 1], [], []>} : vector<8x16xf32>, vector<16x64xf32>, vector<8x64xf32> -> vector<8x64xf32>
    %c2_19 = arith.constant 2 : index
    %c0_20 = arith.constant 0 : index
    %c0_21 = arith.constant 0 : index
    %18 = vector.load %arg2[%c2_19, %c0_20, %c0_21] : memref<3x64x128xf32, #tpu.memory_space<vmem>>, vector<1x64x128xf32>
    %19 = vector.shape_cast %18 : vector<1x64x128xf32> to vector<64x128xf32>
    %cst_22 = arith.constant dense<0.000000e+00> : vector<8x128xf32>
    %20 = tpu.matmul %17, %19, %cst_22 {dimension_numbers = #tpu.dot_dimension_numbers<[1], [0], [0], [1], [0, 0, 1, 1], [], []>} : vector<8x64xf32>, vector<64x128xf32>, vector<8x128xf32> -> vector<8x128xf32>
    %21 = arith.addf %14, %20 : vector<8x128xf32>
    %c0_23 = arith.constant 0 : index
    %c0_24 = arith.constant 0 : index
    %22 = vector.load %arg4[%c0_23, %c0_24] : memref<3x128xf32, #tpu.memory_space<vmem>>, vector<3x128xf32>
    %23 = vector.extract_strided_slice %22 {offsets = [0, 0], sizes = [1, 128], strides = [1, 1]} : vector<3x128xf32> to vector<1x128xf32>
    %24 = vector.broadcast %23 : vector<1x128xf32> to vector<8x128xf32>
    %25 = arith.addf %21, %24 : vector<8x128xf32>
    %cst_25 = arith.constant 0.000000e+00 : f32
    %26 = vector.broadcast %cst_25 : f32 to vector<8x128xf32>
    %27 = arith.cmpf oge, %25, %26 : vector<8x128xf32>
    %cst_26 = arith.constant 2.000000e-01 : f32
    %28 = vector.broadcast %cst_26 : f32 to vector<8x128xf32>
    %29 = arith.mulf %28, %25 : vector<8x128xf32>
    %30 = arith.select %27, %25, %29 : vector<8x128xi1>, vector<8x128xf32>
    %31 = vector.extract_strided_slice %22 {offsets = [1, 0], sizes = [1, 128], strides = [1, 1]} : vector<3x128xf32> to vector<1x128xf32>
    %32 = vector.broadcast %31 : vector<1x128xf32> to vector<8x128xf32>
    %33 = arith.mulf %30, %32 : vector<8x128xf32>
    %34 = vector.extract_strided_slice %22 {offsets = [2, 0], sizes = [1, 128], strides = [1, 1]} : vector<3x128xf32> to vector<1x128xf32>
    %35 = vector.broadcast %34 : vector<1x128xf32> to vector<8x128xf32>
    %36 = arith.addf %33, %35 : vector<8x128xf32>
    %c0_27 = arith.constant 0 : index
    %c0_28 = arith.constant 0 : index
    %c0_29 = arith.constant 0 : index
    %37 = vector.load %arg6[%c0_27, %c0_28, %c0_29] : memref<3x4x8xf32, #tpu.memory_space<vmem>>, vector<1x4x8xf32>
    %38 = vector.shape_cast %37 : vector<1x4x8xf32> to vector<4x8xf32>
    %cst_30 = arith.constant dense<0.000000e+00> : vector<4x128xf32>
    %39 = tpu.matmul %38, %36, %cst_30 {dimension_numbers = #tpu.dot_dimension_numbers<[1], [0], [0], [1], [0, 0, 1, 1], [], []>} : vector<4x8xf32>, vector<8x128xf32>, vector<4x128xf32> -> vector<4x128xf32>
    %c0_31 = arith.constant 0 : index
    %c0_32 = arith.constant 0 : index
    %c0_33 = arith.constant 0 : index
    %40 = vector.load %arg5[%c0_31, %c0_32, %c0_33] : memref<3x128x128xf32, #tpu.memory_space<vmem>>, vector<1x128x128xf32>
    %41 = vector.shape_cast %40 : vector<1x128x128xf32> to vector<128x128xf32>
    %cst_34 = arith.constant dense<0.000000e+00> : vector<4x128xf32>
    %42 = tpu.matmul %39, %41, %cst_34 {dimension_numbers = #tpu.dot_dimension_numbers<[1], [0], [0], [1], [0, 0, 1, 1], [], []>} : vector<4x128xf32>, vector<128x128xf32>, vector<4x128xf32> -> vector<4x128xf32>
    %c1_35 = arith.constant 1 : index
    %c0_36 = arith.constant 0 : index
    %c0_37 = arith.constant 0 : index
    %43 = vector.load %arg6[%c1_35, %c0_36, %c0_37] : memref<3x4x8xf32, #tpu.memory_space<vmem>>, vector<1x4x8xf32>
    %44 = vector.shape_cast %43 : vector<1x4x8xf32> to vector<4x8xf32>
    %cst_38 = arith.constant dense<0.000000e+00> : vector<4x128xf32>
    %45 = tpu.matmul %44, %36, %cst_38 {dimension_numbers = #tpu.dot_dimension_numbers<[1], [0], [0], [1], [0, 0, 1, 1], [], []>} : vector<4x8xf32>, vector<8x128xf32>, vector<4x128xf32> -> vector<4x128xf32>
    %c1_39 = arith.constant 1 : index
    %c0_40 = arith.constant 0 : index
    %c0_41 = arith.constant 0 : index
    %46 = vector.load %arg5[%c1_39, %c0_40, %c0_41] : memref<3x128x128xf32, #tpu.memory_space<vmem>>, vector<1x128x128xf32>
    %47 = vector.shape_cast %46 : vector<1x128x128xf32> to vector<128x128xf32>
    %cst_42 = arith.constant dense<0.000000e+00> : vector<4x128xf32>
    %48 = tpu.matmul %45, %47, %cst_42 {dimension_numbers = #tpu.dot_dimension_numbers<[1], [0], [0], [1], [0, 0, 1, 1], [], []>} : vector<4x128xf32>, vector<128x128xf32>, vector<4x128xf32> -> vector<4x128xf32>
    %49 = arith.addf %42, %48 : vector<4x128xf32>
    %c2_43 = arith.constant 2 : index
    %c0_44 = arith.constant 0 : index
    %c0_45 = arith.constant 0 : index
    %50 = vector.load %arg6[%c2_43, %c0_44, %c0_45] : memref<3x4x8xf32, #tpu.memory_space<vmem>>, vector<1x4x8xf32>
    %51 = vector.shape_cast %50 : vector<1x4x8xf32> to vector<4x8xf32>
    %cst_46 = arith.constant dense<0.000000e+00> : vector<4x128xf32>
    %52 = tpu.matmul %51, %36, %cst_46 {dimension_numbers = #tpu.dot_dimension_numbers<[1], [0], [0], [1], [0, 0, 1, 1], [], []>} : vector<4x8xf32>, vector<8x128xf32>, vector<4x128xf32> -> vector<4x128xf32>
    %c2_47 = arith.constant 2 : index
    %c0_48 = arith.constant 0 : index
    %c0_49 = arith.constant 0 : index
    %53 = vector.load %arg5[%c2_47, %c0_48, %c0_49] : memref<3x128x128xf32, #tpu.memory_space<vmem>>, vector<1x128x128xf32>
    %54 = vector.shape_cast %53 : vector<1x128x128xf32> to vector<128x128xf32>
    %cst_50 = arith.constant dense<0.000000e+00> : vector<4x128xf32>
    %55 = tpu.matmul %52, %54, %cst_50 {dimension_numbers = #tpu.dot_dimension_numbers<[1], [0], [0], [1], [0, 0, 1, 1], [], []>} : vector<4x128xf32>, vector<128x128xf32>, vector<4x128xf32> -> vector<4x128xf32>
    %56 = arith.addf %49, %55 : vector<4x128xf32>
    %c0_51 = arith.constant 0 : index
    %c0_52 = arith.constant 0 : index
    %57 = vector.load %arg7[%c0_51, %c0_52] : memref<3x128xf32, #tpu.memory_space<vmem>>, vector<3x128xf32>
    %58 = vector.extract_strided_slice %57 {offsets = [0, 0], sizes = [1, 128], strides = [1, 1]} : vector<3x128xf32> to vector<1x128xf32>
    %59 = vector.broadcast %58 : vector<1x128xf32> to vector<4x128xf32>
    %60 = arith.addf %56, %59 : vector<4x128xf32>
    %cst_53 = arith.constant 0.000000e+00 : f32
    %61 = vector.broadcast %cst_53 : f32 to vector<4x128xf32>
    %62 = arith.cmpf oge, %60, %61 : vector<4x128xf32>
    %cst_54 = arith.constant 2.000000e-01 : f32
    %63 = vector.broadcast %cst_54 : f32 to vector<4x128xf32>
    %64 = arith.mulf %63, %60 : vector<4x128xf32>
    %65 = arith.select %62, %60, %64 : vector<4x128xi1>, vector<4x128xf32>
    %66 = vector.extract_strided_slice %57 {offsets = [1, 0], sizes = [1, 128], strides = [1, 1]} : vector<3x128xf32> to vector<1x128xf32>
    %67 = vector.broadcast %66 : vector<1x128xf32> to vector<4x128xf32>
    %68 = arith.mulf %65, %67 : vector<4x128xf32>
    %69 = vector.extract_strided_slice %57 {offsets = [2, 0], sizes = [1, 128], strides = [1, 1]} : vector<3x128xf32> to vector<1x128xf32>
    %70 = vector.broadcast %69 : vector<1x128xf32> to vector<4x128xf32>
    %71 = arith.addf %68, %70 : vector<4x128xf32>
    %c0_55 = arith.constant 0 : index
    %c0_56 = arith.constant 0 : index
    %c0_57 = arith.constant 0 : index
    %72 = vector.load %arg9[%c0_55, %c0_56, %c0_57] : memref<3x2x4xf32, #tpu.memory_space<vmem>>, vector<1x2x4xf32>
    %73 = vector.shape_cast %72 : vector<1x2x4xf32> to vector<2x4xf32>
    %cst_58 = arith.constant dense<0.000000e+00> : vector<2x128xf32>
    %74 = tpu.matmul %73, %71, %cst_58 {dimension_numbers = #tpu.dot_dimension_numbers<[1], [0], [0], [1], [0, 0, 1, 1], [], []>} : vector<2x4xf32>, vector<4x128xf32>, vector<2x128xf32> -> vector<2x128xf32>
    %c0_59 = arith.constant 0 : index
    %c0_60 = arith.constant 0 : index
    %c0_61 = arith.constant 0 : index
    %75 = vector.load %arg8[%c0_59, %c0_60, %c0_61] : memref<3x128x128xf32, #tpu.memory_space<vmem>>, vector<1x128x128xf32>
    %76 = vector.shape_cast %75 : vector<1x128x128xf32> to vector<128x128xf32>
    %cst_62 = arith.constant dense<0.000000e+00> : vector<2x128xf32>
    %77 = tpu.matmul %74, %76, %cst_62 {dimension_numbers = #tpu.dot_dimension_numbers<[1], [0], [0], [1], [0, 0, 1, 1], [], []>} : vector<2x128xf32>, vector<128x128xf32>, vector<2x128xf32> -> vector<2x128xf32>
    %c1_63 = arith.constant 1 : index
    %c0_64 = arith.constant 0 : index
    %c0_65 = arith.constant 0 : index
    %78 = vector.load %arg9[%c1_63, %c0_64, %c0_65] : memref<3x2x4xf32, #tpu.memory_space<vmem>>, vector<1x2x4xf32>
    %79 = vector.shape_cast %78 : vector<1x2x4xf32> to vector<2x4xf32>
    %cst_66 = arith.constant dense<0.000000e+00> : vector<2x128xf32>
    %80 = tpu.matmul %79, %71, %cst_66 {dimension_numbers = #tpu.dot_dimension_numbers<[1], [0], [0], [1], [0, 0, 1, 1], [], []>} : vector<2x4xf32>, vector<4x128xf32>, vector<2x128xf32> -> vector<2x128xf32>
    %c1_67 = arith.constant 1 : index
    %c0_68 = arith.constant 0 : index
    %c0_69 = arith.constant 0 : index
    %81 = vector.load %arg8[%c1_67, %c0_68, %c0_69] : memref<3x128x128xf32, #tpu.memory_space<vmem>>, vector<1x128x128xf32>
    %82 = vector.shape_cast %81 : vector<1x128x128xf32> to vector<128x128xf32>
    %cst_70 = arith.constant dense<0.000000e+00> : vector<2x128xf32>
    %83 = tpu.matmul %80, %82, %cst_70 {dimension_numbers = #tpu.dot_dimension_numbers<[1], [0], [0], [1], [0, 0, 1, 1], [], []>} : vector<2x128xf32>, vector<128x128xf32>, vector<2x128xf32> -> vector<2x128xf32>
    %84 = arith.addf %77, %83 : vector<2x128xf32>
    %c2_71 = arith.constant 2 : index
    %c0_72 = arith.constant 0 : index
    %c0_73 = arith.constant 0 : index
    %85 = vector.load %arg9[%c2_71, %c0_72, %c0_73] : memref<3x2x4xf32, #tpu.memory_space<vmem>>, vector<1x2x4xf32>
    %86 = vector.shape_cast %85 : vector<1x2x4xf32> to vector<2x4xf32>
    %cst_74 = arith.constant dense<0.000000e+00> : vector<2x128xf32>
    %87 = tpu.matmul %86, %71, %cst_74 {dimension_numbers = #tpu.dot_dimension_numbers<[1], [0], [0], [1], [0, 0, 1, 1], [], []>} : vector<2x4xf32>, vector<4x128xf32>, vector<2x128xf32> -> vector<2x128xf32>
    %c2_75 = arith.constant 2 : index
    %c0_76 = arith.constant 0 : index
    %c0_77 = arith.constant 0 : index
    %88 = vector.load %arg8[%c2_75, %c0_76, %c0_77] : memref<3x128x128xf32, #tpu.memory_space<vmem>>, vector<1x128x128xf32>
    %89 = vector.shape_cast %88 : vector<1x128x128xf32> to vector<128x128xf32>
    %cst_78 = arith.constant dense<0.000000e+00> : vector<2x128xf32>
    %90 = tpu.matmul %87, %89, %cst_78 {dimension_numbers = #tpu.dot_dimension_numbers<[1], [0], [0], [1], [0, 0, 1, 1], [], []>} : vector<2x128xf32>, vector<128x128xf32>, vector<2x128xf32> -> vector<2x128xf32>
    %91 = arith.addf %84, %90 : vector<2x128xf32>
    %c0_79 = arith.constant 0 : index
    %c0_80 = arith.constant 0 : index
    %92 = vector.load %arg10[%c0_79, %c0_80] : memref<3x128xf32, #tpu.memory_space<vmem>>, vector<3x128xf32>
    %93 = vector.extract_strided_slice %92 {offsets = [0, 0], sizes = [1, 128], strides = [1, 1]} : vector<3x128xf32> to vector<1x128xf32>
    %94 = vector.broadcast %93 : vector<1x128xf32> to vector<2x128xf32>
    %95 = arith.addf %91, %94 : vector<2x128xf32>
    %cst_81 = arith.constant 0.000000e+00 : f32
    %96 = vector.broadcast %cst_81 : f32 to vector<2x128xf32>
    %97 = arith.cmpf oge, %95, %96 : vector<2x128xf32>
    %cst_82 = arith.constant 2.000000e-01 : f32
    %98 = vector.broadcast %cst_82 : f32 to vector<2x128xf32>
    %99 = arith.mulf %98, %95 : vector<2x128xf32>
    %100 = arith.select %97, %95, %99 : vector<2x128xi1>, vector<2x128xf32>
    %101 = vector.extract_strided_slice %92 {offsets = [1, 0], sizes = [1, 128], strides = [1, 1]} : vector<3x128xf32> to vector<1x128xf32>
    %102 = vector.broadcast %101 : vector<1x128xf32> to vector<2x128xf32>
    %103 = arith.mulf %100, %102 : vector<2x128xf32>
    %104 = vector.extract_strided_slice %92 {offsets = [2, 0], sizes = [1, 128], strides = [1, 1]} : vector<3x128xf32> to vector<1x128xf32>
    %105 = vector.broadcast %104 : vector<1x128xf32> to vector<2x128xf32>
    %106 = arith.addf %103, %105 : vector<2x128xf32>
    %c0_83 = arith.constant 0 : index
    %c0_84 = arith.constant 0 : index
    %c0_85 = arith.constant 0 : index
    %107 = vector.load %arg12[%c0_83, %c0_84, %c0_85] : memref<3x1x2xf32, #tpu.memory_space<vmem>>, vector<1x1x2xf32>
    %108 = vector.shape_cast %107 : vector<1x1x2xf32> to vector<1x2xf32>
    %cst_86 = arith.constant dense<0.000000e+00> : vector<1x128xf32>
    %109 = tpu.matmul %108, %106, %cst_86 {dimension_numbers = #tpu.dot_dimension_numbers<[1], [0], [0], [1], [0, 0, 1, 1], [], []>} : vector<1x2xf32>, vector<2x128xf32>, vector<1x128xf32> -> vector<1x128xf32>
    %c0_87 = arith.constant 0 : index
    %c0_88 = arith.constant 0 : index
    %c0_89 = arith.constant 0 : index
    %110 = vector.load %arg11[%c0_87, %c0_88, %c0_89] : memref<3x128x128xf32, #tpu.memory_space<vmem>>, vector<1x128x128xf32>
    %111 = vector.shape_cast %110 : vector<1x128x128xf32> to vector<128x128xf32>
    %cst_90 = arith.constant dense<0.000000e+00> : vector<1x128xf32>
    %112 = tpu.matmul %109, %111, %cst_90 {dimension_numbers = #tpu.dot_dimension_numbers<[1], [0], [0], [1], [0, 0, 1, 1], [], []>} : vector<1x128xf32>, vector<128x128xf32>, vector<1x128xf32> -> vector<1x128xf32>
    %c1_91 = arith.constant 1 : index
    %c0_92 = arith.constant 0 : index
    %c0_93 = arith.constant 0 : index
    %113 = vector.load %arg12[%c1_91, %c0_92, %c0_93] : memref<3x1x2xf32, #tpu.memory_space<vmem>>, vector<1x1x2xf32>
    %114 = vector.shape_cast %113 : vector<1x1x2xf32> to vector<1x2xf32>
    %cst_94 = arith.constant dense<0.000000e+00> : vector<1x128xf32>
    %115 = tpu.matmul %114, %106, %cst_94 {dimension_numbers = #tpu.dot_dimension_numbers<[1], [0], [0], [1], [0, 0, 1, 1], [], []>} : vector<1x2xf32>, vector<2x128xf32>, vector<1x128xf32> -> vector<1x128xf32>
    %c1_95 = arith.constant 1 : index
    %c0_96 = arith.constant 0 : index
    %c0_97 = arith.constant 0 : index
    %116 = vector.load %arg11[%c1_95, %c0_96, %c0_97] : memref<3x128x128xf32, #tpu.memory_space<vmem>>, vector<1x128x128xf32>
    %117 = vector.shape_cast %116 : vector<1x128x128xf32> to vector<128x128xf32>
    %cst_98 = arith.constant dense<0.000000e+00> : vector<1x128xf32>
    %118 = tpu.matmul %115, %117, %cst_98 {dimension_numbers = #tpu.dot_dimension_numbers<[1], [0], [0], [1], [0, 0, 1, 1], [], []>} : vector<1x128xf32>, vector<128x128xf32>, vector<1x128xf32> -> vector<1x128xf32>
    %119 = arith.addf %112, %118 : vector<1x128xf32>
    %c2_99 = arith.constant 2 : index
    %c0_100 = arith.constant 0 : index
    %c0_101 = arith.constant 0 : index
    %120 = vector.load %arg12[%c2_99, %c0_100, %c0_101] : memref<3x1x2xf32, #tpu.memory_space<vmem>>, vector<1x1x2xf32>
    %121 = vector.shape_cast %120 : vector<1x1x2xf32> to vector<1x2xf32>
    %cst_102 = arith.constant dense<0.000000e+00> : vector<1x128xf32>
    %122 = tpu.matmul %121, %106, %cst_102 {dimension_numbers = #tpu.dot_dimension_numbers<[1], [0], [0], [1], [0, 0, 1, 1], [], []>} : vector<1x2xf32>, vector<2x128xf32>, vector<1x128xf32> -> vector<1x128xf32>
    %c2_103 = arith.constant 2 : index
    %c0_104 = arith.constant 0 : index
    %c0_105 = arith.constant 0 : index
    %123 = vector.load %arg11[%c2_103, %c0_104, %c0_105] : memref<3x128x128xf32, #tpu.memory_space<vmem>>, vector<1x128x128xf32>
    %124 = vector.shape_cast %123 : vector<1x128x128xf32> to vector<128x128xf32>
    %cst_106 = arith.constant dense<0.000000e+00> : vector<1x128xf32>
    %125 = tpu.matmul %122, %124, %cst_106 {dimension_numbers = #tpu.dot_dimension_numbers<[1], [0], [0], [1], [0, 0, 1, 1], [], []>} : vector<1x128xf32>, vector<128x128xf32>, vector<1x128xf32> -> vector<1x128xf32>
    %126 = arith.addf %119, %125 : vector<1x128xf32>
    %c0_107 = arith.constant 0 : index
    %c0_108 = arith.constant 0 : index
    %127 = vector.load %arg13[%c0_107, %c0_108] : memref<3x128xf32, #tpu.memory_space<vmem>>, vector<3x128xf32>
    %128 = vector.extract_strided_slice %127 {offsets = [0, 0], sizes = [1, 128], strides = [1, 1]} : vector<3x128xf32> to vector<1x128xf32>
    %129 = arith.addf %126, %128 : vector<1x128xf32>
    %cst_109 = arith.constant 0.000000e+00 : f32
    %130 = vector.broadcast %cst_109 : f32 to vector<1x128xf32>
    %131 = arith.cmpf oge, %129, %130 : vector<1x128xf32>
    %cst_110 = arith.constant 2.000000e-01 : f32
    %132 = vector.broadcast %cst_110 : f32 to vector<1x128xf32>
    %133 = arith.mulf %132, %129 : vector<1x128xf32>
    %134 = arith.select %131, %129, %133 : vector<1x128xi1>, vector<1x128xf32>
    %135 = vector.extract_strided_slice %127 {offsets = [1, 0], sizes = [1, 128], strides = [1, 1]} : vector<3x128xf32> to vector<1x128xf32>
    %136 = arith.mulf %134, %135 : vector<1x128xf32>
    %137 = vector.extract_strided_slice %127 {offsets = [2, 0], sizes = [1, 128], strides = [1, 1]} : vector<3x128xf32> to vector<1x128xf32>
    %138 = arith.addf %136, %137 : vector<1x128xf32>
    %c0_111 = arith.constant 0 : index
    %c0_112 = arith.constant 0 : index
    %139 = vector.load %arg14[%c0_111, %c0_112] : memref<1x128xf32, #tpu.memory_space<vmem>>, vector<1x128xf32>
    %140 = arith.mulf %138, %139 : vector<1x128xf32>
    %cst_113 = arith.constant dense<0.000000e+00> : vector<1xf32>
    %141 = vector.multi_reduction <add>, %140, %cst_113 [1] : vector<1x128xf32> to vector<1xf32>
    %142 = vector.shape_cast %141 : vector<1xf32> to vector<1x1xf32>
    %cst_114 = arith.constant dense<0.000000e+00> : vector<1xf32>
    %143 = vector.multi_reduction <add>, %142, %cst_114 [0] : vector<1x1xf32> to vector<1xf32>
    %144 = vector.shape_cast %143 : vector<1xf32> to vector<1x1xf32>
    %c0_115 = arith.constant 0 : index
    %c0_116 = arith.constant 0 : index
    %145 = vector.load %arg15[%c0_115, %c0_116] : memref<1x1xf32, #tpu.memory_space<vmem>>, vector<1x1xf32>
    %146 = arith.addf %144, %145 : vector<1x1xf32>
    %147 = arith.negf %146 : vector<1x1xf32>
    %148 = math.exp %147 : vector<1x1xf32>
    %cst_117 = arith.constant 1.000000e+00 : f32
    %149 = vector.broadcast %cst_117 : f32 to vector<1x1xf32>
    %150 = arith.addf %149, %148 : vector<1x1xf32>
    %151 = arith.divf %149, %150 : vector<1x1xf32>
    %152 = vector.shape_cast %151 : vector<1x1xf32> to vector<1x1x1xf32>
    %c0_118 = arith.constant 0 : index
    %c0_119 = arith.constant 0 : index
    %c0_120 = arith.constant 0 : index
    %153 = vector.load %arg16[%c0_118, %c0_119, %c0_120] : memref<1x1x1xf32, #tpu.memory_space<vmem>>, vector<1x1x1xf32>
    tpu.vector_store %arg16[%c0_118, %c0_119, %c0_120], %152 {strides = array<i32>} : memref<1x1x1xf32, #tpu.memory_space<vmem>>, vector<1x1x1xf32>,
    return
  }
  func.func @transform_0(%arg0: i32) -> (i32, i32, i32) {
    %c0_i32 = arith.constant 0 : i32
    %c0_i32_0 = arith.constant 0 : i32
    %c0_i32_1 = arith.constant 0 : i32
    return %arg0, %c0_i32, %c0_i32_0 : i32, i32, i32
  }
  func.func @transform_1(%arg0: i32) -> (i32, i32, i32) {
    %c0_i32 = arith.constant 0 : i32
    %c0_i32_0 = arith.constant 0 : i32
    %c0_i32_1 = arith.constant 0 : i32
    %c0_i32_2 = arith.constant 0 : i32
    return %c0_i32, %c0_i32_0, %c0_i32_1 : i32, i32, i32
  }
  func.func @transform_2(%arg0: i32) -> (i32, i32, i32) {
    %c0_i32 = arith.constant 0 : i32
    %c0_i32_0 = arith.constant 0 : i32
    %c0_i32_1 = arith.constant 0 : i32
    %c0_i32_2 = arith.constant 0 : i32
    return %c0_i32, %c0_i32_0, %c0_i32_1 : i32, i32, i32
  }
  func.func @transform_3(%arg0: i32) -> (i32, i32) {
    %c0_i32 = arith.constant 0 : i32
    %c0_i32_0 = arith.constant 0 : i32
    %c0_i32_1 = arith.constant 0 : i32
    return %c0_i32, %c0_i32_0 : i32, i32
  }
  func.func @transform_4(%arg0: i32) -> (i32, i32, i32) {
    %c0_i32 = arith.constant 0 : i32
    %c0_i32_0 = arith.constant 0 : i32
    %c0_i32_1 = arith.constant 0 : i32
    %c0_i32_2 = arith.constant 0 : i32
    return %c0_i32, %c0_i32_0, %c0_i32_1 : i32, i32, i32
  }
  func.func @transform_5(%arg0: i32) -> (i32, i32, i32) {
    %c0_i32 = arith.constant 0 : i32
    %c0_i32_0 = arith.constant 0 : i32
    %c0_i32_1 = arith.constant 0 : i32
    %c0_i32_2 = arith.constant 0 : i32
    return %c0_i32, %c0_i32_0, %c0_i32_1 : i32, i32, i32
  }
  func.func @transform_6(%arg0: i32) -> (i32, i32) {
    %c0_i32 = arith.constant 0 : i32
    %c0_i32_0 = arith.constant 0 : i32
    %c0_i32_1 = arith.constant 0 : i32
    return %c0_i32, %c0_i32_0 : i32, i32
  }
  func.func @transform_7(%arg0: i32) -> (i32, i32, i32) {
    %c0_i32 = arith.constant 0 : i32
    %c0_i32_0 = arith.constant 0 : i32
    %c0_i32_1 = arith.constant 0 : i32
    %c0_i32_2 = arith.constant 0 : i32
    return %c0_i32, %c0_i32_0, %c0_i32_1 : i32, i32, i32
  }
  func.func @transform_8(%arg0: i32) -> (i32, i32, i32) {
    %c0_i32 = arith.constant 0 : i32
    %c0_i32_0 = arith.constant 0 : i32
    %c0_i32_1 = arith.constant 0 : i32
    %c0_i32_2 = arith.constant 0 : i32
    return %c0_i32, %c0_i32_0, %c0_i32_1 : i32, i32, i32
  }
  func.func @transform_9(%arg0: i32) -> (i32, i32) {
    %c0_i32 = arith.constant 0 : i32
    %c0_i32_0 = arith.constant 0 : i32
    %c0_i32_1 = arith.constant 0 : i32
    return %c0_i32, %c0_i32_0 : i32, i32
  }
  func.func @transform_10(%arg0: i32) -> (i32, i32, i32) {
    %c0_i32 = arith.constant 0 : i32
    %c0_i32_0 = arith.constant 0 : i32
    %c0_i32_1 = arith.constant 0 : i32
    %c0_i32_2 = arith.constant 0 : i32
    return %c0_i32, %c0_i32_0, %c0_i32_1 : i32, i32, i32
  }
  func.func @transform_11(%arg0: i32) -> (i32, i32, i32) {
    %c0_i32 = arith.constant 0 : i32
    %c0_i32_0 = arith.constant 0 : i32
    %c0_i32_1 = arith.constant 0 : i32
    %c0_i32_2 = arith.constant 0 : i32
    return %c0_i32, %c0_i32_0, %c0_i32_1 : i32, i32, i32
  }
  func.func @transform_12(%arg0: i32) -> (i32, i32) {
    %c0_i32 = arith.constant 0 : i32
    %c0_i32_0 = arith.constant 0 : i32
    %c0_i32_1 = arith.constant 0 : i32
    return %c0_i32, %c0_i32_0 : i32, i32
  }
  func.func @transform_13(%arg0: i32) -> (i32, i32) {
    %c0_i32 = arith.constant 0 : i32
    %c0_i32_0 = arith.constant 0 : i32
    %c0_i32_1 = arith.constant 0 : i32
    return %c0_i32, %c0_i32_0 : i32, i32
  }
  func.func @transform_14(%arg0: i32) -> (i32, i32) {
    %c0_i32 = arith.constant 0 : i32
    %c0_i32_0 = arith.constant 0 : i32
    %c0_i32_1 = arith.constant 0 : i32
    return %c0_i32, %c0_i32_0 : i32, i32
  }
  func.func @transform_15(%arg0: i32) -> (i32, i32, i32) {
    %c0_i32 = arith.constant 0 : i32
    %c0_i32_0 = arith.constant 0 : i32
    %c0_i32_1 = arith.constant 0 : i32
    return %arg0, %c0_i32, %c0_i32_0 : i32, i32, i32
  }
}

</mosaic_0001>

<bundles_post_ra>
// kernel: tile.45
= control target key start
LH: loop header
LB: loop body
LE: loop exit
PB: predicated region body
PF: predicated region fallthrough
CT: control target
= control target key end

     0   :  { %s22_s0 = inlined_call_operand.vmem [shape: f32[16], index: 0, kind: input, shape index: {}]   ;;  %s23_s1 = inlined_call_operand.vmem [shape: f32[8,16], index: 1, kind: output, shape index: {}]  }
   0x1   :  { %v4_v0 = vld [vmem:[%s22_s0] ss:$0 sm:$0xff] }
   0x2   :  { %5 = vst [vmem:[%s23_s1] sm:$0xff] %v4_v0 }

// kernel: tile.46
= control target key start
LH: loop header
LB: loop body
LE: loop exit
PB: predicated region body
PF: predicated region fallthrough
CT: control target
= control target key end

     0   :  { %s67_s10 = smov 112   ;;  %s68_s11 = smov 80   ;;  %vm3_vm0 = vcmask 130048   ;;  %vm9_vm1 = vcmask 1048448   ;;  %vm15_vm2 = vcmask 917248   ;;  %vm21_vm3 = vcmask 786048   ;;  %s111_s0 = inlined_call_operand.vmem [shape: f32[8,16], index: 0, kind: input, shape index: {}]   ;;  %s112_s1 = inlined_call_operand.vmem [shape: f32[1,128], index: 1, kind: output, shape index: {}]  }
   0x1   :  { %v53_v0 = vld [vmem:[%s111_s0 + $0x7] sm:$0x1]   ;;  %v55_v1 = vld [vmem:[%s111_s0 + $0x5] sm:$0x1]   ;;  %v54_v2 = vld [vmem:[%s111_s0 + $0x6] sm:$0x1]  }
   0x2   :  { %7 = vrot.lane.b32.xlu0 %v53_v0, %s67_s10  ;;  %19 = vrot.lane.b32.xlu1 %v55_v1, %s68_s11  ;;  %v56_v3 = vld [vmem:[%s111_s0 + $0x4] sm:$0x1]   ;;  %v2_v4 = vld [vmem:[%s111_s0] sm:$0x1]   ;;  %s69_s18 = smov 96   ;;  %s70_s19 = smov 64  }
   0x3   :  { %4 = vst.msk [vmem:[#allocation0] sm:$0x1] %vm3_vm0, %v2_v4   ;;  %v57_v5 = vld [vmem:[%s111_s0 + $0x3] sm:$0x1]   ;;  %v58_v6 = vld [vmem:[%s111_s0 + $0x2] sm:$0x1]  }
   0x4   :  { %s71_s24 = smov 48   ;;  %s72_s25 = smov 32   ;;  %v59_v7 = vld [vmem:[%s111_s0 + $0x1] sm:$0x1]   ;;  %vm27_vm4 = vcmask 654848   ;;  %vm33_vm5 = vcmask 523648  }
   0x5   :  { %s73_s0 = smov 16   ;;  %vm39_vm6 = vcmask 392448   ;;  %vm45_vm7 = vcmask 261248  }
   0x6   :  { %13 = vrot.lane.b32.xlu0 %v54_v2, %s69_s18  ;;  %25 = vrot.lane.b32.xlu1 %v56_v3, %s70_s19 }
   0xa   :  { %31 = vrot.lane.b32.xlu0 %v57_v5, %s71_s24  ;;  %37 = vrot.lane.b32.xlu1 %v58_v6, %s72_s25 }
   0xe   :  { %43 = vrot.lane.b32.xlu0 %v59_v7, %s73_s0 }
  0x74   :  { %v8_v8 = vpop.permute.xlu0 %7   ;;  %v20_v9 = vpop.permute.xlu1 %19  }
  0x75   :  { %10 = vst.msk [vmem:[#allocation0] sm:$0x1] %vm9_vm1, %v8_v8  }
  0x78   :  { %v14_v10 = vpop.permute.xlu0 %13   ;;  %v26_v11 = vpop.permute.xlu1 %25  }
  0x79   :  { %16 = vst.msk [vmem:[#allocation0] sm:$0x1] %vm15_vm2, %v14_v10  }
  0x7a   :  { %22 = vst.msk [vmem:[#allocation0] sm:$0x1] %vm21_vm3, %v20_v9  }
  0x7b   :  { %28 = vst.msk [vmem:[#allocation0] sm:$0x1] %vm27_vm4, %v26_v11  }
  0x7c   :  { %v32_v12 = vpop.permute.xlu0 %31   ;;  %v38_v13 = vpop.permute.xlu1 %37  }
  0x7d   :  { %34 = vst.msk [vmem:[#allocation0] sm:$0x1] %vm33_vm5, %v32_v12  }
  0x7e   :  { %40 = vst.msk [vmem:[#allocation0] sm:$0x1] %vm39_vm6, %v38_v13  }
  0x80   :  { %v44_v14 = vpop.permute.xlu0 %43  }
  0x81   :  { %46 = vst.msk [vmem:[#allocation0] sm:$0x1] %vm45_vm7, %v44_v14  }
  0x88   :  { %v50_v15 = vld [vmem:[#allocation0] sm:$0x1] }
  0x89   :  { %52 = vst [vmem:[%s112_s1] sm:$0x1] %v50_v15 }

// kernel: tile.58
= control target key start
LH: loop header
LB: loop body
LE: loop exit
PB: predicated region body
PF: predicated region fallthrough
CT: control target
= control target key end

     0   :  { %s22_s0 = inlined_call_operand.vmem [shape: f32[32], index: 0, kind: input, shape index: {}]   ;;  %s23_s1 = inlined_call_operand.vmem [shape: f32[4,32], index: 1, kind: output, shape index: {}]  }
   0x1   :  { %v4_v0 = vld [vmem:[%s22_s0] ss:$0 sm:$0xff] }
   0x2   :  { %5 = vst [vmem:[%s23_s1] sm:$0xf] %v4_v0 }

// kernel: tile.61
= control target key start
LH: loop header
LB: loop body
LE: loop exit
PB: predicated region body
PF: predicated region fallthrough
CT: control target
= control target key end

     0   :  { %vm7_vm0 = vcmask 261120   ;;  %s37_s8 = smov 32   ;;  %s38_s9 = smov 64   ;;  %vm13_vm1 = vcmask 1048320   ;;  %vm19_vm2 = vcmask 785920   ;;  %vm25_vm3 = vcmask 523520   ;;  %s55_s0 = inlined_call_operand.vmem [shape: f32[4,32], index: 0, kind: input, shape index: {}]   ;;  %s56_s1 = inlined_call_operand.vmem [shape: f32[1,128], index: 1, kind: output, shape index: {}]  }
   0x1   :  { %v4_v0 = vld [vmem:[%s55_s0] sm:$0xf]  ;;  %s36_s0 = smov 96  }
   0x2   :  { %5 = vst [vmem:[#allocation1] sm:$0xf] %v4_v0 }
   0x9   :  { %v10_v1 = vld [vmem:[#allocation1 + $0x3] sm:$0x1]   ;;  %v22_v2 = vld [vmem:[#allocation1 + $0x1] sm:$0x1]   ;;  %v6_v3 = vld [vmem:[#allocation1] sm:$0x1]  }
   0xa   :  { %11 = vrot.lane.b32.xlu0 %v10_v1, %s36_s0  ;;  %23 = vrot.lane.b32.xlu1 %v22_v2, %s37_s8  ;;  %v16_v4 = vld [vmem:[#allocation1 + $0x2] sm:$0x1]   ;;  %8 = vst.msk [vmem:[#allocation0] sm:$0x1] %vm7_vm0, %v6_v3  }
   0xe   :  { %17 = vrot.lane.b32.xlu0 %v16_v4, %s38_s9 }
  0x7c   :  { %v12_v5 = vpop.permute.xlu0 %11   ;;  %v24_v6 = vpop.permute.xlu1 %23  }
  0x7d   :  { %14 = vst.msk [vmem:[#allocation0] sm:$0x1] %vm13_vm1, %v12_v5  }
  0x80   :  { %v18_v7 = vpop.permute.xlu0 %17  }
  0x81   :  { %20 = vst.msk [vmem:[#allocation0] sm:$0x1] %vm19_vm2, %v18_v7  }
  0x82   :  { %26 = vst.msk [vmem:[#allocation0] sm:$0x1] %vm25_vm3, %v24_v6  }
  0x89   :  { %v30_v8 = vld [vmem:[#allocation0] sm:$0x1] }
  0x8a   :  { %32 = vst [vmem:[%s56_s1] sm:$0x1] %v30_v8 }

// kernel: tile.73
= control target key start
LH: loop header
LB: loop body
LE: loop exit
PB: predicated region body
PF: predicated region fallthrough
CT: control target
= control target key end

     0   :  { %s22_s0 = inlined_call_operand.vmem [shape: f32[64], index: 0, kind: input, shape index: {}]   ;;  %s23_s1 = inlined_call_operand.vmem [shape: f32[2,64], index: 1, kind: output, shape index: {}]  }
   0x1   :  { %v4_v0 = vld [vmem:[%s22_s0] ss:$0 sm:$0xff] }
   0x2   :  { %5 = vst [vmem:[%s23_s1] sm:$0x3] %v4_v0 }

// kernel: tile.76
= control target key start
LH: loop header
LB: loop body
LE: loop exit
PB: predicated region body
PF: predicated region fallthrough
CT: control target
= control target key end

     0   :  { %vm7_vm0 = vcmask 523264   ;;  %vm13_vm1 = vcmask 1048064   ;;  %s39_s0 = inlined_call_operand.vmem [shape: f32[2,64], index: 0, kind: input, shape index: {}]   ;;  %s40_s1 = inlined_call_operand.vmem [shape: f32[1,128], index: 1, kind: output, shape index: {}]  }
   0x1   :  { %v4_v0 = vld [vmem:[%s39_s0] sm:$0x3]  ;;  %s22_s0 = smov 64  }
   0x2   :  { %5 = vst [vmem:[#allocation1] sm:$0x3] %v4_v0 }
   0x9   :  { %v10_v1 = vld [vmem:[#allocation1 + $0x1] sm:$0x1]   ;;  %v6_v2 = vld [vmem:[#allocation1] sm:$0x1]  }
   0xa   :  { %11 = vrot.lane.b32.xlu0 %v10_v1, %s22_s0  ;;  %8 = vst.msk [vmem:[#allocation0] sm:$0x1] %vm7_vm0, %v6_v2  }
  0x7c   :  { %v12_v3 = vpop.permute.xlu0 %11  }
  0x7d   :  { %14 = vst.msk [vmem:[#allocation0] sm:$0x1] %vm13_vm1, %v12_v3  }
  0x84   :  { %v18_v4 = vld [vmem:[#allocation0] sm:$0x1] }
  0x85   :  { %20 = vst [vmem:[%s40_s1] sm:$0x1] %v18_v4 }

// kernel: discriminator_forward.1
= control target key start
LH: loop header
LB: loop body
LE: loop exit
PB: predicated region body
PF: predicated region fallthrough
CT: control target
= control target key end

     0   :  { %s3733_s20 = smov 0   ;;  %s4489_s0 = inlined_call_operand.vmem [shape: f32[2,16,64], index: 0, kind: input, shape index: {}]   ;;  %s4490_s1 = inlined_call_operand.vmem [shape: f32[3,64,128], index: 1, kind: input, shape index: {}]   ;;  %s4491_s2 = inlined_call_operand.vmem [shape: f32[3,8,16], index: 2, kind: input, shape index: {}]   ;;  %s4492_s3 = inlined_call_operand.vmem [shape: f32[3,128], index: 3, kind: input, shape index: {}]   ;;  %s4493_s4 = inlined_call_operand.vmem [shape: f32[3,128,128], index: 4, kind: input, shape index: {}]   ;;  %s4494_s5 = inlined_call_operand.vmem [shape: f32[3,4,8], index: 5, kind: input, shape index: {}]   ;;  %s4495_s6 = inlined_call_operand.vmem [shape: f32[3,128], index: 6, kind: input, shape index: {}]   ;;  %s4496_s7 = inlined_call_operand.vmem [shape: f32[3,128,128], index: 7, kind: input, shape index: {}]   ;;  %s4497_s8 = inlined_call_operand.vmem [shape: f32[3,2,4], index: 8, kind: input, shape index: {}]   ;;  %s4498_s9 = inlined_call_operand.vmem [shape: f32[3,128], index: 9, kind: input, shape index: {}]   ;;  %s4499_s10 = inlined_call_operand.vmem [shape: f32[3,128,128], index: 10, kind: input, shape index: {}]   ;;  %s4500_s11 = inlined_call_operand.vmem [shape: f32[3,1,2], index: 11, kind: input, shape index: {}]   ;;  %s4501_s12 = inlined_call_operand.vmem [shape: f32[3,128], index: 12, kind: input, shape index: {}]   ;;  %s4502_s13 = inlined_call_operand.vmem [shape: f32[1,128], index: 13, kind: input, shape index: {}]   ;;  %s4503_s14 = inlined_call_operand.<no memory space> [shape: f32[1,1], index: 14, kind: input, shape index: {}]   ;;  %s4504_s15 = inlined_call_operand.vmem [shape: f32[2,1,1], index: 15, kind: output, shape index: {}]  }
   0x1   :  { %v20_v0 = vstv %s4503_s14 }
   0x2   :  { %21 = vst [vmem:[#allocation2] sm:$0x1] %v20_v0 }
   0x3 LB: > { %s2566_s21 = sadd.s32 4294967295, %s3645_s20   ;;  %p2570_p0 = scmp.ge.s32.totalorder %s3645_s20, 1  ;;  %s3645_s20 = sphi %s3733_s20, %s27_s20  }
   0x4   : > { %p439_p1 = scmp.lt.s32.totalorder %s3645_s20, 3 }
   0x6   : > { %p440_p2 = pnand %p2570_p0, %p439_p1 }
   0x7   : > { %p485_p3 = scmp.lt.s32.totalorder (!%p440_p2), %s2566_s21, 1  ;;  %v3647_v1 = vmov (!%p440_p2), 0.0|0.0   ;;  %vm3648_vm0 = vmmov (!%p440_p2), 0   ;;  %v3649_v2 = vmov (!%p440_p2), 0.0   ;;  %v2576_v6 = vld [vmem:[%s4490_s1 + $0x40] sm:$0xff] (!%p440_p2)  ;;  %v2577_v7 = vld [vmem:[%s4490_s1 + $0x48] sm:$0xff] (!%p440_p2) }
   0x8   : > { %443 = sbr.rel (%p440_p2) target bundleno = 2633 (0xa49), region = 80  ;;  %3366 = vmatprep.subr.bf16.mxu1 (!%p440_p2), %v3647_v1  ;;  %2936 = vmatprep.mubr.msk.f32.mxu1 (!%p440_p2), %vm3648_vm0, %v3649_v2  ;;  %vm496_vm1 = vcmask (!%p440_p2), 130048   ;;  %v2574_v8 = vld [vmem:[%s4491_s2 + $0x8] sm:$0xff] (!%p440_p2)  ;;  %v495_v9 = vld [vmem:[%s4491_s2] sm:$0xff] (!%p440_p2)  ;;  %v3370_v10 = vpack.c.bf16 (!%p440_p2), %v2577_v7, %v2576_v6  ;;  %v2578_v11 = vld [vmem:[%s4490_s1 + $0x50] sm:$0xff] (!%p440_p2)  ;;  %vm662_vm2 = vcmask (!%p440_p2), 523264  }
   0x9   : > { %3363 = vmatprep.subr.bf16.mxu0 (!%p440_p2), %v3647_v1  ;;  %2929 = vmatprep.mubr.msk.f32.mxu0 (!%p440_p2), %vm3648_vm0, %v3649_v2  ;;  %v2579_v12 = vld [vmem:[%s4490_s1 + $0x58] sm:$0xff] (!%p440_p2)  ;;  %v2586_v13 = vld [vmem:[%s4491_s2 + $0x10] sm:$0xff] (!%p440_p2)  ;;  %v2580_v15 = vld [vmem:[%s4490_s1 + $0x60] sm:$0xff] (!%p440_p2)  ;;  %vm987_vm4 = vcmask (!%p440_p2), 64512   ;;  %vm1496_vm6 = vcmask (!%p440_p2), 1043456   ;;  %vm1492_vm7 = vcmask (!%p440_p2), 31744  }
   0xa   : > { %v3373_v14 = vpack.c.bf16 (!%p440_p2), %v2579_v12, %v2578_v11  ;;  %v2581_v16 = vld [vmem:[%s4490_s1 + $0x68] sm:$0xff] (!%p440_p2)  ;;  %v2582_v18 = vld [vmem:[%s4490_s1 + $0x70] sm:$0xff] (!%p440_p2)  ;;  %v2583_v19 = vld [vmem:[%s4490_s1 + $0x78] sm:$0xff] (!%p440_p2)  ;;  %vm2005_vm9 = vcmask (!%p440_p2), 1041408   ;;  %vm2001_vm10 = vcmask (!%p440_p2), 15360   ;;  %vm2504_vm12 = vcmask (!%p440_p2), 1040384  }
   0xb   : > { %v3376_v17 = vpack.c.bf16 (!%p440_p2), %v2581_v16, %v2580_v15  ;;  %v3379_v20 = vpack.c.bf16 (!%p440_p2), %v2583_v19, %v2582_v18  ;;  %v570_v21 = vld [vmem:[%s4490_s1] sm:$0xff] (!%p440_p2)  ;;  %v571_v22 = vld [vmem:[%s4490_s1 + $0x8] sm:$0xff] (!%p440_p2)  ;;  %v572_v24 = vld [vmem:[%s4490_s1 + $0x10] sm:$0xff] (!%p440_p2)  ;;  %v968_v18 = vlaneseq (!%p440_p2)  ;;  %vm2517_vm13 = vcmask (!%p440_p2), 0  }
   0xc   : > { %v3382_v23 = vpack.c.bf16 (!%p440_p2), %v571_v22, %v570_v21  ;;  %v573_v25 = vld [vmem:[%s4490_s1 + $0x18] sm:$0xff] (!%p440_p2)  ;;  %v574_v31 = vld [vmem:[%s4490_s1 + $0x20] sm:$0xff] (!%p440_p2)  ;;  %v575_v32 = vld [vmem:[%s4490_s1 + $0x28] sm:$0xff] (!%p440_p2) }
   0xd   : > { %v3385_v30 = vpack.c.bf16 (!%p440_p2), %v573_v25, %v572_v24  ;;  %v3388_v35 = vpack.c.bf16 (!%p440_p2), %v575_v32, %v574_v31  ;;  %v576_v36 = vld [vmem:[%s4490_s1 + $0x30] sm:$0xff] (!%p440_p2)  ;;  %v577_v37 = vld [vmem:[%s4490_s1 + $0x38] sm:$0xff] (!%p440_p2)  ;;  %v2588_v39 = vld [vmem:[%s4490_s1 + $0x80] sm:$0xff] (!%p440_p2)  ;;  %v969_v19 = vshrl.u32 (!%p440_p2), %v968_v18, 7 }
   0xe   : > { %v3391_v38 = vpack.c.bf16 (!%p440_p2), %v577_v37, %v576_v36  ;;  %v2589_v40 = vld [vmem:[%s4490_s1 + $0x88] sm:$0xff] (!%p440_p2)  ;;  %v2590_v42 = vld [vmem:[%s4490_s1 + $0x90] sm:$0xff] (!%p440_p2)  ;;  %v2591_v43 = vld [vmem:[%s4490_s1 + $0x98] sm:$0xff] (!%p440_p2) }
   0xf   : > { %s4506_s21 = smov (!%p485_p3, %s2566_s21), 1  ;;  %v3397_v41 = vpack.c.bf16 %v2589_v40, %v2588_v39  ;;  %v3400_v44 = vpack.c.bf16 %v2591_v43, %v2590_v42  ;;  %v2592_v45 = vld [vmem:[%s4490_s1 + $0xa0] sm:$0xff]  ;;  %v2593_v46 = vld [vmem:[%s4490_s1 + $0xa8] sm:$0xff]  ;;  %v2594_v48 = vld [vmem:[%s4490_s1 + $0xb0] sm:$0xff]  ;;  %v3929_v24 = vsub.s32 1, %v969_v19 }
  0x10   : > { %s2717_s14 = sshll.u32 %s4506_s21, 4  ;;  %v3403_v47 = vpack.c.bf16 %v2593_v46, %v2592_v45  ;;  %v2595_v49 = vld [vmem:[%s4490_s1 + $0xb8] sm:$0xff]  ;;  %v1061_v51 = vld [vmem:[%s4493_s4] sm:$0xff]  ;;  %v1062_v52 = vld [vmem:[%s4493_s4 + $0x8] sm:$0xff]  ;;  %s492_s18 = scalar_lea.vmem %s4504_s15, %s4506_s21 }
  0x11   : > { %s489_s24 = scalar_lea.vmem %s4489_s0, %s2717_s14  ;;  %v3406_v50 = vpack.c.bf16 %v2595_v49, %v2594_v48  ;;  %v3433_v53 = vpack.c.bf16 %v1062_v52, %v1061_v51  ;;  %v1063_v54 = vld [vmem:[%s4493_s4 + $0x10] sm:$0xff]  ;;  %v1064_v55 = vld [vmem:[%s4493_s4 + $0x18] sm:$0xff]  ;;  %v1065_v57 = vld [vmem:[%s4493_s4 + $0x20] sm:$0xff] }
  0x12   : > { %v493_v3 = vld [vmem:[%s489_s24] sm:$0xff]  ;;  %v494_v4 = vld [vmem:[%s489_s24 + $0x8] sm:$0xff]  ;;  %v3436_v56 = vpack.c.bf16 %v1064_v55, %v1063_v54  ;;  %v1067_v60 = vld [vmem:[%s4493_s4 + $0x30] sm:$0xff] }
  0x13   : > { %v3364_v5 = vpack.c.bf16 %v494_v4, %v493_v3  ;;  %v1066_v58 = vld [vmem:[%s4493_s4 + $0x28] sm:$0xff]  ;;  %v1068_v61 = vld [vmem:[%s4493_s4 + $0x38] sm:$0xff]  ;;  %v1069_v63 = vld [vmem:[%s4493_s4 + $0x40] sm:$0xff] }
  0x14   : > { %v3439_v59 = vpack.c.bf16 %v1066_v58, %v1065_v57  ;;  %v3442_v62 = vpack.c.bf16 %v1068_v61, %v1067_v60  ;;  %v1070_v0 = vld [vmem:[%s4493_s4 + $0x48] sm:$0xff]  ;;  %v1071_v4 = vld [vmem:[%s4493_s4 + $0x50] sm:$0xff]  ;;  %v1073_v7 = vld [vmem:[%s4493_s4 + $0x60] sm:$0xff] }
  0x15   : > { %3368 = vmatpush3.bf16.msra.mxu1 %v3364_v5  ;;  %3365 = vmatpush3.bf16.msra.mxu0 %v3364_v5  ;;  %v3445_v3 = vpack.c.bf16 %v1070_v0, %v1069_v63  ;;  %v1076_v11 = vld [vmem:[%s4493_s4 + $0x78] sm:$0xff]  ;;  %v967_v21 = vld [vmem:[%s4492_s3] sm:$0x7]  ;;  %v2601_v37 = vld [vmem:[%s4493_s4 + $0x88] sm:$0xff] }
  0x16   : > { %3393 = vmatprep.subr.bf16.mxu0 %v3647_v1  ;;  %3369 = vmatprep.subr.bf16.mxu1 %v3647_v1  ;;  %v2600_v36 = vld [vmem:[%s4493_s4 + $0x80] sm:$0xff]  ;;  %v2602_v40 = vld [vmem:[%s4493_s4 + $0x90] sm:$0xff]  ;;  %v2619_v0 = vld [vmem:[%s4493_s4 + $0x108] sm:$0xff] }
  0x17   : > { %v3409_v39 = vpack.c.bf16 %v2601_v37, %v2600_v36  ;;  %v2604_v43 = vld [vmem:[%s4493_s4 + $0xa0] sm:$0xff]  ;;  %v2606_v46 = vld [vmem:[%s4493_s4 + $0xb0] sm:$0xff] }
  0x18   : > { %2937 = vmatmul.mubr.msk.f32.vlgmr.msra.gmra.mrb[0].mxu1 %vm496_vm1, %v2574_v8  ;;  %2930 = vmatmul.mubr.msk.f32.vlgmr.msra.gmra.mrb[0].mxu0 %vm496_vm1, %v495_v9  ;;  %v1074_v8 = vld [vmem:[%s4493_s4 + $0x68] sm:$0xff]  ;;  %v2608_v49 = vld [vmem:[%s4493_s4 + $0xc0] sm:$0xff]  ;;  %v2610_v52 = vld [vmem:[%s4493_s4 + $0xd0] sm:$0xff] }
  0x19   : > { %3395 = vmatpush3.bf16.msra.mxu0 %v3364_v5  ;;  %2981 = vmatprep.mubr.msk.f32.mxu0 %vm3648_vm0, %v3649_v2  ;;  %v1072_v5 = vld [vmem:[%s4493_s4 + $0x58] sm:$0xff]  ;;  %v3451_v9 = vpack.c.bf16 %v1074_v8, %v1073_v7  ;;  %v2612_v55 = vld [vmem:[%s4493_s4 + $0xe0] sm:$0xff]  ;;  %v2614_v58 = vld [vmem:[%s4493_s4 + $0xf0] sm:$0xff] }
  0x1a   : > { %3371 = vmatpush3.bf16.msra.mxu1 %v3370_v10  ;;  %2955 = vmatprep.mubr.msk.f32.mxu1 %vm3648_vm0, %v3649_v2  ;;  %v3448_v6 = vpack.c.bf16 %v1072_v5, %v1071_v4  ;;  %v1075_v10 = vld [vmem:[%s4493_s4 + $0x70] sm:$0xff]  ;;  %v2618_v63 = vld [vmem:[%s4493_s4 + $0x100] sm:$0xff]  ;;  %v2616_v5 = vld [vmem:[%s4494_s5 + $0x8] sm:$0xf] }
  0x1b   : > { %3372 = vmatprep.subr.bf16.mxu1 %v3647_v1  ;;  %3003 = vmatprep.subr.mxu0 %v3649_v2  ;;  %v3454_v12 = vpack.c.bf16 %v1076_v11, %v1075_v10  ;;  %v2620_v7 = vld [vmem:[%s4493_s4 + $0x110] sm:$0xff]  ;;  %v2621_v8 = vld [vmem:[%s4493_s4 + $0x118] sm:$0xff]  ;;  %v2622_v10 = vld [vmem:[%s4493_s4 + $0x120] sm:$0xff] }
  0x1c   : > { %2982 = vmatmul.mubr.msk.f32.vlgmr.msra.gmra.mrb[2].mxu0 %vm496_vm1, %v2586_v13  ;;  %v2623_v11 = vld [vmem:[%s4493_s4 + $0x128] sm:$0xff] }
  0x1d   : > { %3005 = vmatprep.mubr.msk.f32.mxu0 %vm3648_vm0, %v3649_v2 }
  0x1e   : > { %3374 = vmatpush3.bf16.msra.mxu1 %v3373_v14 }
  0x1f   : > { %3375 = vmatprep.subr.bf16.mxu1 %v3647_v1 }
  0x22   : > { %3377 = vmatpush3.bf16.msra.mxu1 %v3376_v17 }
  0x23   : > { %3378 = vmatprep.subr.bf16.mxu1 %v3647_v1 }
  0x26   : > { %3380 = vmatpush3.bf16.msra.mxu1 %v3379_v20  ;;  %v3923_v20 = vsub.s32 0, %v969_v19 }
  0x27   : > { %3381 = vmatprep.subr.bf16.mxu1 %v3647_v1 }
  0x28   : > { %v971_v22 = vrot.slane %v967_v21, %v3923_v20 }
  0xeb   : > { %v649_v26 = vpop.f32.mrb[0].mxu1  ;;  %v566_v27 = vpop.f32.mrb[0].mxu0 }
  0xec   : > { %v2938_v28 = vpop.f32.mrb[1].mxu1  ;;  %2956 = vmatmul.mubr.msk.f32.vlgmr.msra.gmra.mrb[2].mxu1 %vm662_vm2, %v649_v26  ;;  %v2931_v29 = vpop.f32.mrb[1].mxu0 }
  0xed   : > { %3383 = vmatpush3.bf16.msra.mxu1 %v3382_v23  ;;  %2974 = vmatprep.mubr.msk.f32.mxu1 %vm3648_vm0, %v3649_v2  ;;  %v979_v29 = vrot.slane %v967_v21, %v3929_v24 }
  0xee   : > { %3384 = vmatprep.subr.bf16.mxu1 %v3647_v1 }
  0xef   : > { %v880_v33 = vpop.f32.mrb[2].mxu0 }
  0xf0   : > { %v2983_v34 = vpop.f32.mrb[3].mxu0 }
  0xf1   : > { %3386 = vmatpush3.bf16.msra.mxu1 %v3385_v30 }
  0xf2   : > { %3387 = vmatprep.subr.bf16.mxu1 %v3647_v1 }
  0xf5   : > { %3389 = vmatpush3.bf16.msra.mxu1 %v3388_v35  ;;  %v986_v35 = vld [vmem:[%s4494_s5] sm:$0xf] }
  0xf6   : > { %3390 = vmatprep.subr.bf16.mxu1 %v3647_v1 }
  0xf9   : > { %3392 = vmatpush3.bf16.msra.mxu1 %v3391_v38  ;;  %v2598_v38 = vld [vmem:[%s4494_s5 + $0x4] sm:$0xf] }
  0xfa   : > { %3396 = vmatprep.subr.bf16.mxu1 %v3647_v1 }
  0xfc   : > { %2975 = vmatmul.mubr.msk.f32.vlgmr.msra.gmra.mrb[4].mxu1 %vm662_vm2, %v566_v27  ;;  %v3931_v27 = vsub.s32 2, %v969_v19  ;;  %v2628_v19 = vld [vmem:[%s4493_s4 + $0x150] sm:$0xff] }
  0xfd   : > { %3398 = vmatpush3.bf16.msra.mxu1 %v3397_v41  ;;  %3000 = vmatprep.mubr.msk.f32.mxu1 %vm3648_vm0, %v3649_v2  ;;  %v2603_v41 = vld [vmem:[%s4493_s4 + $0x98] sm:$0xff] }
  0xfe   : > { %3399 = vmatprep.subr.bf16.mxu1 %v3647_v1  ;;  %v984_v31 = vrot.slane %v967_v21, %v3931_v27  ;;  %v3412_v42 = vpack.c.bf16 %v2603_v41, %v2602_v40  ;;  %v2629_v21 = vld [vmem:[%s4493_s4 + $0x158] sm:$0xff]  ;;  %v1572_v41 = vld [vmem:[%s4496_s7 + $0x10] sm:$0xff] }
 0x101   : > { %3401 = vmatpush3.bf16.msra.mxu1 %v3400_v44  ;;  %v2605_v44 = vld [vmem:[%s4493_s4 + $0xa8] sm:$0xff] }
 0x102   : > { %3402 = vmatprep.subr.bf16.mxu1 %v3647_v1  ;;  %v3415_v45 = vpack.c.bf16 %v2605_v44, %v2604_v43  ;;  %v1574_v44 = vld [vmem:[%s4496_s7 + $0x20] sm:$0xff] }
 0x105   : > { %3404 = vmatpush3.bf16.msra.mxu1 %v3403_v47  ;;  %v2607_v47 = vld [vmem:[%s4493_s4 + $0xb8] sm:$0xff] }
 0x106   : > { %3405 = vmatprep.subr.bf16.mxu1 %v3647_v1  ;;  %v3418_v48 = vpack.c.bf16 %v2607_v47, %v2606_v46  ;;  %v1576_v47 = vld [vmem:[%s4496_s7 + $0x30] sm:$0xff] }
 0x109   : > { %3407 = vmatpush3.bf16.msra.mxu1 %v3406_v50  ;;  %v2609_v50 = vld [vmem:[%s4493_s4 + $0xc8] sm:$0xff] }
 0x10a   : > { %3432 = vmatprep.subr.bf16.mxu1 %v3647_v1  ;;  %v3421_v51 = vpack.c.bf16 %v2609_v50, %v2608_v49  ;;  %v1578_v50 = vld [vmem:[%s4496_s7 + $0x40] sm:$0xff] }
 0x10c   : > { %3001 = vmatmul.mubr.msk.f32.vlgmr.msra.gmra.mrb[6].mxu1 %vm662_vm2, %v880_v33 }
 0x10d   : > { %3080 = vmatprep.mubr.msk.f32.mxu1 %vm3648_vm0, %v3649_v2  ;;  %3434 = vmatpush3.bf16.msra.mxu1 %v3433_v53  ;;  %v2611_v53 = vld [vmem:[%s4493_s4 + $0xd8] sm:$0xff] }
 0x10e   : > { %3435 = vmatprep.subr.bf16.mxu1 %v3647_v1  ;;  %v3424_v54 = vpack.c.bf16 %v2611_v53, %v2610_v52  ;;  %v1580_v53 = vld [vmem:[%s4496_s7 + $0x50] sm:$0xff] }
 0x111   : > { %3437 = vmatpush3.bf16.msra.mxu1 %v3436_v56  ;;  %v2613_v56 = vld [vmem:[%s4493_s4 + $0xe8] sm:$0xff] }
 0x112   : > { %3438 = vmatprep.subr.bf16.mxu1 %v3647_v1  ;;  %v3427_v57 = vpack.c.bf16 %v2613_v56, %v2612_v55  ;;  %v1582_v56 = vld [vmem:[%s4496_s7 + $0x60] sm:$0xff] }
 0x115   : > { %3440 = vmatpush3.bf16.msra.mxu1 %v3439_v59  ;;  %v2615_v59 = vld [vmem:[%s4493_s4 + $0xf8] sm:$0xff] }
 0x116   : > { %3441 = vmatprep.subr.bf16.mxu1 %v3647_v1  ;;  %v3430_v60 = vpack.c.bf16 %v2615_v59, %v2614_v58  ;;  %v1584_v59 = vld [vmem:[%s4496_s7 + $0x70] sm:$0xff] }
 0x119   : > { %3443 = vmatpush3.bf16.msra.mxu1 %v3442_v62 }
 0x11a   : > { %3444 = vmatprep.subr.bf16.mxu1 %v3647_v1 }
 0x11d   : > { %3446 = vmatpush3.bf16.msra.mxu1 %v3445_v3 }
 0x11e   : > { %3447 = vmatprep.subr.bf16.mxu1 %v3647_v1 }
 0x121   : > { %3449 = vmatpush3.bf16.msra.mxu1 %v3448_v6  ;;  %v3457_v6 = vpack.c.bf16 %v2619_v0, %v2618_v63 }
 0x122   : > { %3450 = vmatprep.subr.bf16.mxu1 %v3647_v1 }
 0x125   : > { %3452 = vmatpush3.bf16.msra.mxu1 %v3451_v9  ;;  %v3460_v9 = vpack.c.bf16 %v2621_v8, %v2620_v7 }
 0x126   : > { %3453 = vmatprep.subr.bf16.mxu1 %v3647_v1 }
 0x129   : > { %3455 = vmatpush3.bf16.msra.mxu1 %v3454_v12  ;;  %v3463_v12 = vpack.c.bf16 %v2623_v11, %v2622_v10 }
 0x12a   : > { %3123 = vmatprep.subr.mxu1 %v3649_v2 }
 0x1bf   : > { %v732_v13 = vpop.f32.mrb[2].mxu1 }
 0x1c0   : > { %v2957_v14 = vpop.f32.mrb[3].mxu1 }
 0x1c1   : > { %v2625_v14 = vld [vmem:[%s4493_s4 + $0x138] sm:$0xff] }
 0x1cf   : > { %v805_v15 = vpop.f32.mrb[4].mxu1 }
 0x1d0   : > { %v806_v16 = vadd.f32 %v805_v15, %v732_v13  ;;  %v2976_v17 = vpop.f32.mrb[5].mxu1  ;;  %v2624_v13 = vld [vmem:[%s4493_s4 + $0x130] sm:$0xff] }
 0x1d1   : > { %v3466_v15 = vpack.c.bf16 %v2625_v14, %v2624_v13  ;;  %v2627_v17 = vld [vmem:[%s4493_s4 + $0x148] sm:$0xff]  ;;  %v2639_v13 = vld [vmem:[%s4496_s7 + $0x80] sm:$0xff] }
 0x1d2   : > { %v2640_v14 = vld [vmem:[%s4496_s7 + $0x88] sm:$0xff] }
 0x1df   : > { %v962_v23 = vpop.f32.mrb[6].mxu1 }
 0x1e0   : > { %v966_v25 = vadd.f32 %v962_v23, %v806_v16  ;;  %v3002_v26 = vpop.f32.mrb[7].mxu1  ;;  %v2626_v16 = vld [vmem:[%s4493_s4 + $0x140] sm:$0xff] }
 0x1e1   : > { %v3469_v18 = vpack.c.bf16 %v2627_v17, %v2626_v16  ;;  %v2630_v23 = vld [vmem:[%s4493_s4 + $0x160] sm:$0xff]  ;;  %v3481_v16 = vpack.c.bf16 %v2640_v14, %v2639_v13  ;;  %v2641_v17 = vld [vmem:[%s4496_s7 + $0x90] sm:$0xff] }
 0x1e2   : > { %v972_v28 = vadd.f32 %v971_v22, %v966_v25  ;;  %v3472_v22 = vpack.c.bf16 %v2629_v21, %v2628_v19  ;;  %v2631_v25 = vld [vmem:[%s4493_s4 + $0x168] sm:$0xff]  ;;  %v2643_v21 = vld [vmem:[%s4496_s7 + $0xa0] sm:$0xff] }
 0x1e3   : > { %v3475_v26 = vpack.c.bf16 %v2631_v25, %v2630_v23  ;;  %v2645_v25 = vld [vmem:[%s4496_s7 + $0xb0] sm:$0xff] }
 0x1e4   : > { %vm973_vm3 = vcmp.ge.f32.partialorder %v972_v28, 0.0  ;;  %v974_v30 = vmul.f32 0.2, %v972_v28 }
 0x1e6   : > { %v975_v32 = vsel %vm973_vm3, %v972_v28, %v974_v30  ;;  %v2632_v28 = vld [vmem:[%s4493_s4 + $0x170] sm:$0xff] }
 0x1e7   : > { %v980_v33 = vmul.f32 %v979_v29, %v975_v32  ;;  %v2633_v29 = vld [vmem:[%s4493_s4 + $0x178] sm:$0xff] }
 0x1e8   : > { %v3478_v30 = vpack.c.bf16 %v2633_v29, %v2632_v28  ;;  %v2647_v29 = vld [vmem:[%s4496_s7 + $0xc0] sm:$0xff] }
 0x1e9   : > { %v985_v34 = vadd.f32 %v984_v31, %v980_v33 }
 0x1eb   : > { %3004 = vmatpush3.msra.mxu0 %v985_v34 }
 0x1ec   : > { %3006 = vmatmul.mubr.msk.f32.vlgmr.msra.gmra.mrb[4].mxu0 %vm987_vm4, %v986_v35  ;;  %3008 = vmatprep.subr.mxu0 %v3649_v2 }
 0x1ed   : > { %3009 = vmatpush3.msra.mxu0 %v985_v34  ;;  %3010 = vmatprep.mubr.msk.f32.mxu0 %vm3648_vm0, %v3649_v2 }
 0x1ee   : > { %3408 = vmatprep.subr.bf16.mxu0 %v3647_v1 }
 0x1f0   : > { %3011 = vmatmul.mubr.msk.f32.vlgmr.msra.gmra.mrb[6].mxu0 %vm987_vm4, %v2598_v38  ;;  %v1570_v38 = vld [vmem:[%s4496_s7] sm:$0xff] }
 0x1f1   : > { %3410 = vmatpush3.bf16.msra.mxu0 %v3409_v39  ;;  %3045 = vmatprep.mubr.msk.f32.mxu0 %vm3648_vm0, %v3649_v2  ;;  %v1571_v39 = vld [vmem:[%s4496_s7 + $0x8] sm:$0xff] }
 0x1f2   : > { %3411 = vmatprep.subr.bf16.mxu0 %v3647_v1  ;;  %v3505_v40 = vpack.c.bf16 %v1571_v39, %v1570_v38  ;;  %v2653_v38 = vld [vmem:[%s4496_s7 + $0xf0] sm:$0xff]  ;;  %v2654_v39 = vld [vmem:[%s4496_s7 + $0xf8] sm:$0xff] }
 0x1f5   : > { %3413 = vmatpush3.bf16.msra.mxu0 %v3412_v42  ;;  %v1573_v42 = vld [vmem:[%s4496_s7 + $0x18] sm:$0xff] }
 0x1f6   : > { %3414 = vmatprep.subr.bf16.mxu0 %v3647_v1  ;;  %v3508_v43 = vpack.c.bf16 %v1573_v42, %v1572_v41 }
 0x1f9   : > { %3416 = vmatpush3.bf16.msra.mxu0 %v3415_v45  ;;  %v1575_v45 = vld [vmem:[%s4496_s7 + $0x28] sm:$0xff] }
 0x1fa   : > { %3417 = vmatprep.subr.bf16.mxu0 %v3647_v1  ;;  %v3511_v46 = vpack.c.bf16 %v1575_v45, %v1574_v44  ;;  %v2659_v44 = vld [vmem:[%s4496_s7 + $0x108] sm:$0xff] }
 0x1fd   : > { %3419 = vmatpush3.bf16.msra.mxu0 %v3418_v48  ;;  %v1577_v48 = vld [vmem:[%s4496_s7 + $0x38] sm:$0xff] }
 0x1fe   : > { %3420 = vmatprep.subr.bf16.mxu0 %v3647_v1  ;;  %v3514_v49 = vpack.c.bf16 %v1577_v48, %v1576_v47  ;;  %v2655_v47 = vld [vmem:[%s4497_s8 + $0x4] sm:$0x3] }
 0x201   : > { %3422 = vmatpush3.bf16.msra.mxu0 %v3421_v51  ;;  %v1579_v51 = vld [vmem:[%s4496_s7 + $0x48] sm:$0xff] }
 0x202   : > { %3423 = vmatprep.subr.bf16.mxu0 %v3647_v1  ;;  %v3517_v52 = vpack.c.bf16 %v1579_v51, %v1578_v50  ;;  %v2661_v50 = vld [vmem:[%s4496_s7 + $0x118] sm:$0xff] }
 0x205   : > { %3425 = vmatpush3.bf16.msra.mxu0 %v3424_v54  ;;  %v1581_v54 = vld [vmem:[%s4496_s7 + $0x58] sm:$0xff] }
 0x206   : > { %3426 = vmatprep.subr.bf16.mxu0 %v3647_v1  ;;  %v3520_v55 = vpack.c.bf16 %v1581_v54, %v1580_v53  ;;  %v2663_v53 = vld [vmem:[%s4496_s7 + $0x128] sm:$0xff] }
 0x209   : > { %3428 = vmatpush3.bf16.msra.mxu0 %v3427_v57  ;;  %v1583_v57 = vld [vmem:[%s4496_s7 + $0x68] sm:$0xff] }
 0x20a   : > { %3429 = vmatprep.subr.bf16.mxu0 %v3647_v1  ;;  %v3523_v58 = vpack.c.bf16 %v1583_v57, %v1582_v56  ;;  %v2665_v56 = vld [vmem:[%s4496_s7 + $0x138] sm:$0xff] }
 0x20d   : > { %3431 = vmatpush3.bf16.msra.mxu0 %v3430_v60  ;;  %v1585_v60 = vld [vmem:[%s4496_s7 + $0x78] sm:$0xff] }
 0x20e   : > { %3083 = vmatprep.subr.mxu0 %v3649_v2 }
 0x2bf   : > { %v1057_v61 = vpop.f32.mrb[4].mxu0 }
 0x2c0   : > { %v3007_v62 = vpop.f32.mrb[5].mxu0  ;;  %3081 = vmatmul.mubr.f32.vlgmr.msra.gmra.mrb[8].mxu1 %v1057_v61  ;;  %v3526_v61 = vpack.c.bf16 %v1585_v60, %v1584_v59  ;;  %v2667_v59 = vld [vmem:[%s4496_s7 + $0x148] sm:$0xff] }
 0x2c1   : > { %3125 = vmatprep.mubr.msk.f32.mxu1 %vm3648_vm0, %v3649_v2  ;;  %v1472_v62 = vld [vmem:[%s4495_s6] sm:$0x7] }
 0x2c2   : > { %v1476_v63 = vrot.slane %v1472_v62, %v3923_v20  ;;  %v1489_v8 = vrot.slane %v1472_v62, %v3931_v27 }
 0x2c3   : > { %v1148_v3 = vpop.f32.mrb[6].mxu0 }
 0x2c4   : > { %v3012_v4 = vpop.f32.mrb[7].mxu0  ;;  %3046 = vmatmul.mubr.f32.vlgmr.msra.gmra.mrb[8].mxu0 %v1148_v3 }
 0x2c5   : > { %3084 = vmatpush3.msra.mxu0 %v985_v34  ;;  %3085 = vmatprep.mubr.msk.f32.mxu0 %vm3648_vm0, %v3649_v2 }
 0x2c6   : > { %3456 = vmatprep.subr.bf16.mxu0 %v3647_v1 }
 0x2c8   : > { %3086 = vmatmul.mubr.msk.f32.vlgmr.msra.gmra.mrb[10].mxu0 %vm987_vm4, %v2616_v5 }
 0x2c9   : > { %3458 = vmatpush3.bf16.msra.mxu0 %v3457_v6  ;;  %3120 = vmatprep.mubr.msk.f32.mxu0 %vm3648_vm0, %v3649_v2  ;;  %v1484_v6 = vrot.slane %v1472_v62, %v3929_v24  ;;  %v2669_v62 = vld [vmem:[%s4496_s7 + $0x158] sm:$0xff] }
 0x2ca   : > { %3459 = vmatprep.subr.bf16.mxu0 %v3647_v1 }
 0x2cd   : > { %3461 = vmatpush3.bf16.msra.mxu0 %v3460_v9 }
 0x2ce   : > { %3462 = vmatprep.subr.bf16.mxu0 %v3647_v1 }
 0x2d1   : > { %3464 = vmatpush3.bf16.msra.mxu0 %v3463_v12  ;;  %v1491_v12 = vld [vmem:[%s4497_s8] sm:$0x3] }
 0x2d2   : > { %3465 = vmatprep.subr.bf16.mxu0 %v3647_v1 }
 0x2d5   : > { %3467 = vmatpush3.bf16.msra.mxu0 %v3466_v15  ;;  %v2636_v15 = vld [vmem:[%s4497_s8 + $0x2] sm:$0x3] }
 0x2d6   : > { %3468 = vmatprep.subr.bf16.mxu0 %v3647_v1 }
 0x2d9   : > { %3470 = vmatpush3.bf16.msra.mxu0 %v3469_v18  ;;  %v2642_v18 = vld [vmem:[%s4496_s7 + $0x98] sm:$0xff] }
 0x2da   : > { %3471 = vmatprep.subr.bf16.mxu0 %v3647_v1  ;;  %v3484_v19 = vpack.c.bf16 %v2642_v18, %v2641_v17  ;;  %v2081_v18 = vld [vmem:[%s4499_s10 + $0x10] sm:$0xff] }
 0x2dd   : > { %3473 = vmatpush3.bf16.msra.mxu0 %v3472_v22  ;;  %v2644_v22 = vld [vmem:[%s4496_s7 + $0xa8] sm:$0xff] }
 0x2de   : > { %3474 = vmatprep.subr.bf16.mxu0 %v3647_v1  ;;  %v3487_v23 = vpack.c.bf16 %v2644_v22, %v2643_v21  ;;  %v2083_v22 = vld [vmem:[%s4499_s10 + $0x20] sm:$0xff] }
 0x2e1   : > { %3476 = vmatpush3.bf16.msra.mxu0 %v3475_v26  ;;  %v2646_v26 = vld [vmem:[%s4496_s7 + $0xb8] sm:$0xff] }
 0x2e2   : > { %3477 = vmatprep.subr.bf16.mxu0 %v3647_v1  ;;  %v3490_v28 = vpack.c.bf16 %v2646_v26, %v2645_v25  ;;  %v2085_v26 = vld [vmem:[%s4499_s10 + $0x30] sm:$0xff] }
 0x2e5   : > { %3479 = vmatpush3.bf16.msra.mxu0 %v3478_v30  ;;  %v2648_v30 = vld [vmem:[%s4496_s7 + $0xc8] sm:$0xff] }
 0x2e6   : > { %3504 = vmatprep.subr.bf16.mxu0 %v3647_v1 }
 0x393   : > { %v1305_v31 = vpop.f32.mrb[8].mxu1 }
 0x394   : > { %v3082_v32 = vpop.f32.mrb[9].mxu1 }
 0x395   : > { %v2649_v32 = vld [vmem:[%s4496_s7 + $0xd0] sm:$0xff] }
 0x397   : > { %v1235_v33 = vpop.f32.mrb[8].mxu0 }
 0x398   : > { %v1306_v34 = vadd.f32 %v1305_v31, %v1235_v33  ;;  %v3047_v35 = vpop.f32.mrb[9].mxu0  ;;  %v3493_v31 = vpack.c.bf16 %v2648_v30, %v2647_v29  ;;  %v2650_v33 = vld [vmem:[%s4496_s7 + $0xd8] sm:$0xff]  ;;  %v2087_v30 = vld [vmem:[%s4499_s10 + $0x40] sm:$0xff] }
 0x399   : > { %v2651_v35 = vld [vmem:[%s4496_s7 + $0xe0] sm:$0xff] }
 0x39b   : > { %v1380_v36 = vpop.f32.mrb[10].mxu0 }
 0x39c   : > { %v3087_v37 = vpop.f32.mrb[11].mxu0  ;;  %3121 = vmatmul.mubr.f32.vlgmr.msra.gmra.mrb[12].mxu0 %v1380_v36  ;;  %v2652_v36 = vld [vmem:[%s4496_s7 + $0xe8] sm:$0xff] }
 0x39d   : > { %3200 = vmatprep.mubr.msk.f32.mxu0 %vm3648_vm0, %v3649_v2  ;;  %3506 = vmatpush3.bf16.msra.mxu0 %v3505_v40  ;;  %v3499_v37 = vpack.c.bf16 %v2652_v36, %v2651_v35  ;;  %v3502_v40 = vpack.c.bf16 %v2654_v39, %v2653_v38  ;;  %v2091_v36 = vld [vmem:[%s4499_s10 + $0x60] sm:$0xff]  ;;  %v2093_v39 = vld [vmem:[%s4499_s10 + $0x70] sm:$0xff] }
 0x39e   : > { %3507 = vmatprep.subr.bf16.mxu0 %v3647_v1 }
 0x3a1   : > { %3509 = vmatpush3.bf16.msra.mxu0 %v3508_v43  ;;  %v2658_v43 = vld [vmem:[%s4496_s7 + $0x100] sm:$0xff] }
 0x3a2   : > { %3510 = vmatprep.subr.bf16.mxu0 %v3647_v1  ;;  %v3529_v48 = vpack.c.bf16 %v2659_v44, %v2658_v43 }
 0x3a5   : > { %3512 = vmatpush3.bf16.msra.mxu0 %v3511_v46 }
 0x3a6   : > { %3513 = vmatprep.subr.bf16.mxu0 %v3647_v1 }
 0x3a9   : > { %3515 = vmatpush3.bf16.msra.mxu0 %v3514_v49  ;;  %v2660_v49 = vld [vmem:[%s4496_s7 + $0x110] sm:$0xff] }
 0x3aa   : > { %3516 = vmatprep.subr.bf16.mxu0 %v3647_v1  ;;  %v3532_v51 = vpack.c.bf16 %v2661_v50, %v2660_v49 }
 0x3ad   : > { %3518 = vmatpush3.bf16.msra.mxu0 %v3517_v52  ;;  %v2662_v52 = vld [vmem:[%s4496_s7 + $0x120] sm:$0xff] }
 0x3ae   : > { %3519 = vmatprep.subr.bf16.mxu0 %v3647_v1  ;;  %v3535_v54 = vpack.c.bf16 %v2663_v53, %v2662_v52 }
 0x3b1   : > { %3521 = vmatpush3.bf16.msra.mxu0 %v3520_v55  ;;  %v2664_v55 = vld [vmem:[%s4496_s7 + $0x130] sm:$0xff] }
 0x3b2   : > { %3522 = vmatprep.subr.bf16.mxu0 %v3647_v1  ;;  %v3538_v57 = vpack.c.bf16 %v2665_v56, %v2664_v55  ;;  %v2681_v56 = vld [vmem:[%s4499_s10 + $0x90] sm:$0xff] }
 0x3b5   : > { %3524 = vmatpush3.bf16.msra.mxu0 %v3523_v58  ;;  %v2666_v58 = vld [vmem:[%s4496_s7 + $0x140] sm:$0xff] }
 0x3b6   : > { %3525 = vmatprep.subr.bf16.mxu0 %v3647_v1  ;;  %v3541_v60 = vpack.c.bf16 %v2667_v59, %v2666_v58  ;;  %v2683_v59 = vld [vmem:[%s4499_s10 + $0xa0] sm:$0xff] }
 0x3b9   : > { %3527 = vmatpush3.bf16.msra.mxu0 %v3526_v61  ;;  %v2668_v61 = vld [vmem:[%s4496_s7 + $0x150] sm:$0xff] }
 0x3ba   : > { %3243 = vmatprep.subr.mxu0 %v3649_v2 }
 0x46f   : > { %v1467_v0 = vpop.f32.mrb[12].mxu0 }
 0x470   : > { %v1471_v3 = vadd.f32 %v1467_v0, %v1306_v34  ;;  %v3122_v4 = vpop.f32.mrb[13].mxu0  ;;  %v3496_v34 = vpack.c.bf16 %v2650_v33, %v2649_v32  ;;  %v2670_v0 = vld [vmem:[%s4496_s7 + $0x160] sm:$0xff]  ;;  %v2089_v33 = vld [vmem:[%s4499_s10 + $0x50] sm:$0xff] }
 0x472   : > { %v1477_v5 = vadd.f32 %v1476_v63, %v1471_v3  ;;  %v3544_v63 = vpack.c.bf16 %v2669_v62, %v2668_v61  ;;  %v2671_v3 = vld [vmem:[%s4496_s7 + $0x168] sm:$0xff]  ;;  %v2685_v62 = vld [vmem:[%s4499_s10 + $0xb0] sm:$0xff] }
 0x473   : > { %v3547_v4 = vpack.c.bf16 %v2671_v3, %v2670_v0  ;;  %v2687_v3 = vld [vmem:[%s4499_s10 + $0xc0] sm:$0xff] }
 0x474   : > { %vm1478_vm5 = vcmp.ge.f32.partialorder %v1477_v5, 0.0  ;;  %v1479_v7 = vmul.f32 0.2, %v1477_v5 }
 0x476   : > { %v1480_v9 = vsel %vm1478_vm5, %v1477_v5, %v1479_v7  ;;  %v2672_v5 = vld [vmem:[%s4496_s7 + $0x170] sm:$0xff] }
 0x477   : > { %v1485_v10 = vmul.f32 %v1484_v6, %v1480_v9  ;;  %v2673_v6 = vld [vmem:[%s4496_s7 + $0x178] sm:$0xff] }
 0x478   : > { %v3550_v7 = vpack.c.bf16 %v2673_v6, %v2672_v5  ;;  %v2689_v6 = vld [vmem:[%s4499_s10 + $0xd0] sm:$0xff] }
 0x479   : > { %v1490_v11 = vadd.f32 %v1489_v8, %v1485_v10 }
 0x47b   : > { %3124 = vmatpush3.msk.msra.mxu1 %vm1496_vm6, %v1490_v11 }
 0x47c   : > { %3126 = vmatmul.mubr.msk.f32.vlgmr.msra.gmra.mrb[10].mxu1 %vm1492_vm7, %v1491_v12  ;;  %3128 = vmatprep.subr.mxu1 %v3649_v2 }
 0x47d   : > { %3129 = vmatpush3.msk.msra.mxu1 %vm1496_vm6, %v1490_v11  ;;  %3130 = vmatprep.mubr.msk.f32.mxu1 %vm3648_vm0, %v3649_v2 }
 0x47e   : > { %3480 = vmatprep.subr.bf16.mxu1 %v3647_v1 }
 0x480   : > { %3131 = vmatmul.mubr.msk.f32.vlgmr.msra.gmra.mrb[12].mxu1 %vm1492_vm7, %v2636_v15  ;;  %v2079_v15 = vld [vmem:[%s4499_s10] sm:$0xff] }
 0x481   : > { %3482 = vmatpush3.bf16.msra.mxu1 %v3481_v16  ;;  %3165 = vmatprep.mubr.msk.f32.mxu1 %vm3648_vm0, %v3649_v2  ;;  %v2080_v16 = vld [vmem:[%s4499_s10 + $0x8] sm:$0xff] }
 0x482   : > { %3483 = vmatprep.subr.bf16.mxu1 %v3647_v1  ;;  %v3577_v17 = vpack.c.bf16 %v2080_v16, %v2079_v15 }
 0x485   : > { %3485 = vmatpush3.bf16.msra.mxu1 %v3484_v19  ;;  %v2082_v19 = vld [vmem:[%s4499_s10 + $0x18] sm:$0xff] }
 0x486   : > { %3486 = vmatprep.subr.bf16.mxu1 %v3647_v1  ;;  %v3580_v21 = vpack.c.bf16 %v2082_v19, %v2081_v18  ;;  %v2699_v18 = vld [vmem:[%s4499_s10 + $0x108] sm:$0xff] }
 0x489   : > { %3488 = vmatpush3.bf16.msra.mxu1 %v3487_v23  ;;  %v2084_v23 = vld [vmem:[%s4499_s10 + $0x28] sm:$0xff] }
 0x48a   : > { %3489 = vmatprep.subr.bf16.mxu1 %v3647_v1  ;;  %v3583_v25 = vpack.c.bf16 %v2084_v23, %v2083_v22  ;;  %v2695_v22 = vld [vmem:[%s4500_s11 + $0x2] sm:$0x1] }
 0x48d   : > { %3491 = vmatpush3.bf16.msra.mxu1 %v3490_v28  ;;  %v2086_v28 = vld [vmem:[%s4499_s10 + $0x38] sm:$0xff] }
 0x48e   : > { %3492 = vmatprep.subr.bf16.mxu1 %v3647_v1  ;;  %v3586_v29 = vpack.c.bf16 %v2086_v28, %v2085_v26  ;;  %v2701_v26 = vld [vmem:[%s4499_s10 + $0x118] sm:$0xff] }
 0x491   : > { %3494 = vmatpush3.bf16.msra.mxu1 %v3493_v31  ;;  %v2088_v31 = vld [vmem:[%s4499_s10 + $0x48] sm:$0xff] }
 0x492   : > { %3495 = vmatprep.subr.bf16.mxu1 %v3647_v1  ;;  %v3589_v32 = vpack.c.bf16 %v2088_v31, %v2087_v30  ;;  %v2703_v30 = vld [vmem:[%s4499_s10 + $0x128] sm:$0xff] }
 0x495   : > { %3497 = vmatpush3.bf16.msra.mxu1 %v3496_v34  ;;  %v2090_v34 = vld [vmem:[%s4499_s10 + $0x58] sm:$0xff] }
 0x496   : > { %3498 = vmatprep.subr.bf16.mxu1 %v3647_v1  ;;  %v3592_v35 = vpack.c.bf16 %v2090_v34, %v2089_v33  ;;  %v2706_v34 = vld [vmem:[%s4499_s10 + $0x140] sm:$0xff] }
 0x499   : > { %3500 = vmatpush3.bf16.msra.mxu1 %v3499_v37  ;;  %v2092_v37 = vld [vmem:[%s4499_s10 + $0x68] sm:$0xff] }
 0x49a   : > { %3501 = vmatprep.subr.bf16.mxu1 %v3647_v1  ;;  %v3595_v38 = vpack.c.bf16 %v2092_v37, %v2091_v36  ;;  %v2708_v37 = vld [vmem:[%s4499_s10 + $0x150] sm:$0xff] }
 0x49d   : > { %3503 = vmatpush3.bf16.msra.mxu1 %v3502_v40  ;;  %v2094_v40 = vld [vmem:[%s4499_s10 + $0x78] sm:$0xff] }
 0x49e   : > { %3203 = vmatprep.subr.mxu1 %v3649_v2 }
 0x54f   : > { %v1566_v41 = vpop.f32.mrb[10].mxu1 }
 0x550   : > { %v3127_v42 = vpop.f32.mrb[11].mxu1  ;;  %3201 = vmatmul.mubr.f32.vlgmr.msra.gmra.mrb[14].mxu0 %v1566_v41  ;;  %v3598_v41 = vpack.c.bf16 %v2094_v40, %v2093_v39  ;;  %v2710_v40 = vld [vmem:[%s4499_s10 + $0x160] sm:$0xff] }
 0x551   : > { %3245 = vmatprep.mubr.msk.f32.mxu0 %vm3648_vm0, %v3649_v2  ;;  %v1981_v42 = vld [vmem:[%s4498_s9] sm:$0x7] }
 0x552   : > { %v1985_v43 = vrot.slane %v1981_v42, %v3923_v20  ;;  %v1998_v50 = vrot.slane %v1981_v42, %v3931_v27  ;;  %v2679_v20 = vld [vmem:[%s4499_s10 + $0x80] sm:$0xff] }
 0x553   : > { %v1657_v45 = vpop.f32.mrb[12].mxu1  ;;  %v2676_v27 = vld [vmem:[%s4500_s11 + $0x1] sm:$0x1] }
 0x554   : > { %v3132_v46 = vpop.f32.mrb[13].mxu1  ;;  %3166 = vmatmul.mubr.f32.vlgmr.msra.gmra.mrb[14].mxu1 %v1657_v45 }
 0x555   : > { %3204 = vmatpush3.msk.msra.mxu1 %vm1496_vm6, %v1490_v11  ;;  %3205 = vmatprep.mubr.msk.f32.mxu1 %vm3648_vm0, %v3649_v2 }
 0x556   : > { %3528 = vmatprep.subr.bf16.mxu1 %v3647_v1 }
 0x558   : > { %3206 = vmatmul.mubr.msk.f32.vlgmr.msra.gmra.mrb[16].mxu1 %vm1492_vm7, %v2655_v47 }
 0x559   : > { %3530 = vmatpush3.bf16.msra.mxu1 %v3529_v48  ;;  %3240 = vmatprep.mubr.msk.f32.mxu1 %vm3648_vm0, %v3649_v2  ;;  %v1993_v48 = vrot.slane %v1981_v42, %v3929_v24  ;;  %v2680_v24 = vld [vmem:[%s4499_s10 + $0x88] sm:$0xff] }
 0x55a   : > { %3531 = vmatprep.subr.bf16.mxu1 %v3647_v1  ;;  %v3553_v55 = vpack.c.bf16 %v2680_v24, %v2679_v20 }
 0x55d   : > { %3533 = vmatpush3.bf16.msra.mxu1 %v3532_v51 }
 0x55e   : > { %3534 = vmatprep.subr.bf16.mxu1 %v3647_v1 }
 0x561   : > { %3536 = vmatpush3.bf16.msra.mxu1 %v3535_v54  ;;  %v2000_v54 = vld [vmem:[%s4500_s11] sm:$0x1] }
 0x562   : > { %3537 = vmatprep.subr.bf16.mxu1 %v3647_v1 }
 0x565   : > { %3539 = vmatpush3.bf16.msra.mxu1 %v3538_v57  ;;  %v2682_v57 = vld [vmem:[%s4499_s10 + $0x98] sm:$0xff] }
 0x566   : > { %3540 = vmatprep.subr.bf16.mxu1 %v3647_v1  ;;  %v3556_v58 = vpack.c.bf16 %v2682_v57, %v2681_v56 }
 0x569   : > { %3542 = vmatpush3.bf16.msra.mxu1 %v3541_v60  ;;  %v2684_v60 = vld [vmem:[%s4499_s10 + $0xa8] sm:$0xff] }
 0x56a   : > { %3543 = vmatprep.subr.bf16.mxu1 %v3647_v1  ;;  %v3559_v61 = vpack.c.bf16 %v2684_v60, %v2683_v59  ;;  %v2502_v59 = vld [vmem:[%s4502_s13] sm:$0x1] }
 0x56d   : > { %3545 = vmatpush3.bf16.msra.mxu1 %v3544_v63  ;;  %v2686_v63 = vld [vmem:[%s4499_s10 + $0xb8] sm:$0xff] }
 0x56e   : > { %3546 = vmatprep.subr.bf16.mxu1 %v3647_v1  ;;  %v3562_v0 = vpack.c.bf16 %v2686_v63, %v2685_v62  ;;  %v2509_v63 = vld [vmem:[#allocation2] sm:$0x1] }
 0x571   : > { %3548 = vmatpush3.bf16.msra.mxu1 %v3547_v4  ;;  %v2688_v4 = vld [vmem:[%s4499_s10 + $0xc8] sm:$0xff] }
 0x572   : > { %3549 = vmatprep.subr.bf16.mxu1 %v3647_v1  ;;  %v3565_v5 = vpack.c.bf16 %v2688_v4, %v2687_v3 }
 0x575   : > { %3551 = vmatpush3.bf16.msra.mxu1 %v3550_v7  ;;  %v2690_v7 = vld [vmem:[%s4499_s10 + $0xd8] sm:$0xff] }
 0x576   : > { %3576 = vmatprep.subr.bf16.mxu1 %v3647_v1 }
 0x623   : > { %v1814_v8 = vpop.f32.mrb[14].mxu0 }
 0x624   : > { %v3202_v9 = vpop.f32.mrb[15].mxu0 }
 0x625   : > { %v2691_v9 = vld [vmem:[%s4499_s10 + $0xe0] sm:$0xff] }
 0x627   : > { %v1744_v10 = vpop.f32.mrb[14].mxu1 }
 0x628   : > { %v1815_v11 = vadd.f32 %v1814_v8, %v1744_v10  ;;  %v3167_v12 = vpop.f32.mrb[15].mxu1  ;;  %v3568_v8 = vpack.c.bf16 %v2690_v7, %v2689_v6  ;;  %v2692_v10 = vld [vmem:[%s4499_s10 + $0xe8] sm:$0xff] }
 0x629   : > { %v2693_v12 = vld [vmem:[%s4499_s10 + $0xf0] sm:$0xff] }
 0x62b   : > { %v1889_v13 = vpop.f32.mrb[16].mxu1 }
 0x62c   : > { %v3207_v14 = vpop.f32.mrb[17].mxu1  ;;  %3241 = vmatmul.mubr.f32.vlgmr.msra.gmra.mrb[18].mxu1 %v1889_v13  ;;  %v2694_v13 = vld [vmem:[%s4499_s10 + $0xf8] sm:$0xff] }
 0x62d   : > { %3320 = vmatprep.mubr.msk.f32.mxu1 %vm3648_vm0, %v3649_v2  ;;  %3578 = vmatpush3.bf16.msra.mxu1 %v3577_v17  ;;  %v3574_v14 = vpack.c.bf16 %v2694_v13, %v2693_v12  ;;  %v2698_v17 = vld [vmem:[%s4499_s10 + $0x100] sm:$0xff] }
 0x62e   : > { %3579 = vmatprep.subr.bf16.mxu1 %v3647_v1  ;;  %v3601_v23 = vpack.c.bf16 %v2699_v18, %v2698_v17 }
 0x631   : > { %3581 = vmatpush3.bf16.msra.mxu1 %v3580_v21 }
 0x632   : > { %3582 = vmatprep.subr.bf16.mxu1 %v3647_v1 }
 0x635   : > { %3584 = vmatpush3.bf16.msra.mxu1 %v3583_v25  ;;  %v2700_v25 = vld [vmem:[%s4499_s10 + $0x110] sm:$0xff] }
 0x636   : > { %3585 = vmatprep.subr.bf16.mxu1 %v3647_v1  ;;  %v3604_v28 = vpack.c.bf16 %v2701_v26, %v2700_v25 }
 0x639   : > { %3587 = vmatpush3.bf16.msra.mxu1 %v3586_v29  ;;  %v2702_v29 = vld [vmem:[%s4499_s10 + $0x120] sm:$0xff] }
 0x63a   : > { %3588 = vmatprep.subr.bf16.mxu1 %v3647_v1  ;;  %v3607_v31 = vpack.c.bf16 %v2703_v30, %v2702_v29 }
 0x63d   : > { %3590 = vmatpush3.bf16.msra.mxu1 %v3589_v32  ;;  %v2704_v32 = vld [vmem:[%s4499_s10 + $0x130] sm:$0xff] }
 0x63e   : > { %3591 = vmatprep.subr.bf16.mxu1 %v3647_v1 }
 0x641   : > { %3593 = vmatpush3.bf16.msra.mxu1 %v3592_v35  ;;  %v2707_v35 = vld [vmem:[%s4499_s10 + $0x148] sm:$0xff] }
 0x642   : > { %3594 = vmatprep.subr.bf16.mxu1 %v3647_v1  ;;  %v3613_v36 = vpack.c.bf16 %v2707_v35, %v2706_v34 }
 0x645   : > { %3596 = vmatpush3.bf16.msra.mxu1 %v3595_v38  ;;  %v2709_v38 = vld [vmem:[%s4499_s10 + $0x158] sm:$0xff] }
 0x646   : > { %3597 = vmatprep.subr.bf16.mxu1 %v3647_v1  ;;  %v3616_v39 = vpack.c.bf16 %v2709_v38, %v2708_v37 }
 0x649   : > { %3599 = vmatpush3.bf16.msra.mxu1 %v3598_v41  ;;  %v2711_v41 = vld [vmem:[%s4499_s10 + $0x168] sm:$0xff] }
 0x64a   : > { %v3619_v42 = vpack.c.bf16 %v2711_v41, %v2710_v40 }
 0x6ff   : > { %v1976_v44 = vpop.f32.mrb[18].mxu1 }
 0x700   : > { %v1980_v45 = vadd.f32 %v1976_v44, %v1815_v11  ;;  %v3242_v46 = vpop.f32.mrb[19].mxu1  ;;  %v3571_v11 = vpack.c.bf16 %v2692_v10, %v2691_v9  ;;  %v2713_v44 = vld [vmem:[%s4499_s10 + $0x178] sm:$0xff] }
 0x702   : > { %v1986_v47 = vadd.f32 %v1985_v43, %v1980_v45  ;;  %v2712_v43 = vld [vmem:[%s4499_s10 + $0x170] sm:$0xff] }
 0x703   : > { %v3622_v45 = vpack.c.bf16 %v2713_v44, %v2712_v43 }
 0x704   : > { %vm1987_vm8 = vcmp.ge.f32.partialorder %v1986_v47, 0.0  ;;  %v1988_v49 = vmul.f32 0.2, %v1986_v47 }
 0x706   : > { %v1989_v51 = vsel %vm1987_vm8, %v1986_v47, %v1988_v49 }
 0x707   : > { %v1994_v52 = vmul.f32 %v1993_v48, %v1989_v51 }
 0x709   : > { %v1999_v53 = vadd.f32 %v1998_v50, %v1994_v52 }
 0x70b   : > { %3244 = vmatpush3.msk.msra.mxu0 %vm2005_vm9, %v1999_v53 }
 0x70c   : > { %3246 = vmatmul.mubr.msk.f32.vlgmr.msra.gmra.mrb[16].mxu0 %vm2001_vm10, %v2000_v54  ;;  %3248 = vmatprep.subr.mxu0 %v3649_v2 }
 0x70d   : > { %3249 = vmatpush3.msk.msra.mxu0 %vm2005_vm9, %v1999_v53  ;;  %3250 = vmatprep.mubr.msk.f32.mxu0 %vm3648_vm0, %v3649_v2 }
 0x70e   : > { %3552 = vmatprep.subr.bf16.mxu0 %v3647_v1 }
 0x710   : > { %3251 = vmatmul.mubr.msk.f32.vlgmr.msra.gmra.mrb[18].mxu0 %vm2001_vm10, %v2676_v27 }
 0x711   : > { %3554 = vmatpush3.bf16.msra.mxu0 %v3553_v55  ;;  %3285 = vmatprep.mubr.msk.f32.mxu0 %vm3648_vm0, %v3649_v2 }
 0x712   : > { %3555 = vmatprep.subr.bf16.mxu0 %v3647_v1 }
 0x715   : > { %3557 = vmatpush3.bf16.msra.mxu0 %v3556_v58 }
 0x716   : > { %3558 = vmatprep.subr.bf16.mxu0 %v3647_v1 }
 0x719   : > { %3560 = vmatpush3.bf16.msra.mxu0 %v3559_v61 }
 0x71a   : > { %3561 = vmatprep.subr.bf16.mxu0 %v3647_v1 }
 0x71d   : > { %3563 = vmatpush3.bf16.msra.mxu0 %v3562_v0 }
 0x71e   : > { %3564 = vmatprep.subr.bf16.mxu0 %v3647_v1 }
 0x721   : > { %3566 = vmatpush3.bf16.msra.mxu0 %v3565_v5 }
 0x722   : > { %3567 = vmatprep.subr.bf16.mxu0 %v3647_v1 }
 0x725   : > { %3569 = vmatpush3.bf16.msra.mxu0 %v3568_v8 }
 0x726   : > { %3570 = vmatprep.subr.bf16.mxu0 %v3647_v1 }
 0x729   : > { %3572 = vmatpush3.bf16.msra.mxu0 %v3571_v11 }
 0x72a   : > { %3573 = vmatprep.subr.bf16.mxu0 %v3647_v1 }
 0x72d   : > { %3575 = vmatpush3.bf16.msra.mxu0 %v3574_v14 }
 0x72e   : > { %3323 = vmatprep.subr.mxu0 %v3649_v2 }
 0x7df   : > { %v2075_v15 = vpop.f32.mrb[16].mxu0 }
 0x7e0   : > { %v3247_v16 = vpop.f32.mrb[17].mxu0  ;;  %3321 = vmatmul.mubr.f32.vlgmr.msra.gmra.mrb[20].mxu1 %v2075_v15 }
 0x7e3   : > { %v2166_v19 = vpop.f32.mrb[18].mxu0 }
 0x7e4   : > { %3286 = vmatmul.mubr.f32.vlgmr.msra.gmra.mrb[20].mxu0 %v2166_v19  ;;  %v3252_v21 = vpop.f32.mrb[19].mxu0 }
 0x7e5   : > { %3324 = vmatpush3.msk.msra.mxu0 %vm2005_vm9, %v1999_v53  ;;  %3325 = vmatprep.mubr.msk.f32.mxu0 %vm3648_vm0, %v3649_v2 }
 0x7e6   : > { %3600 = vmatprep.subr.bf16.mxu0 %v3647_v1 }
 0x7e8   : > { %3326 = vmatmul.mubr.msk.f32.vlgmr.msra.gmra.mrb[22].mxu0 %vm2001_vm10, %v2695_v22 }
 0x7e9   : > { %3602 = vmatpush3.bf16.msra.mxu0 %v3601_v23  ;;  %3360 = vmatprep.mubr.msk.f32.mxu0 %vm3648_vm0, %v3649_v2  ;;  %v2705_v2 = vld [vmem:[%s4499_s10 + $0x138] sm:$0xff] }
 0x7ea   : > { %3603 = vmatprep.subr.bf16.mxu0 %v3647_v1  ;;  %v3610_v33 = vpack.c.bf16 %v2705_v2, %v2704_v32 }
 0x7ed   : > { %3605 = vmatpush3.bf16.msra.mxu0 %v3604_v28 }
 0x7ee   : > { %3606 = vmatprep.subr.bf16.mxu0 %v3647_v1 }
 0x7f1   : > { %3608 = vmatpush3.bf16.msra.mxu0 %v3607_v31 }
 0x7f2   : > { %3609 = vmatprep.subr.bf16.mxu0 %v3647_v1 }
 0x7f5   : > { %3611 = vmatpush3.bf16.msra.mxu0 %v3610_v33 }
 0x7f6   : > { %3612 = vmatprep.subr.bf16.mxu0 %v3647_v1 }
 0x7f9   : > { %3614 = vmatpush3.bf16.msra.mxu0 %v3613_v36 }
 0x7fa   : > { %3615 = vmatprep.subr.bf16.mxu0 %v3647_v1 }
 0x7fd   : > { %3617 = vmatpush3.bf16.msra.mxu0 %v3616_v39 }
 0x7fe   : > { %3618 = vmatprep.subr.bf16.mxu0 %v3647_v1 }
 0x801   : > { %3620 = vmatpush3.bf16.msra.mxu0 %v3619_v42 }
 0x802   : > { %3621 = vmatprep.subr.bf16.mxu0 %v3647_v1  ;;  %v2490_v1 = vld [vmem:[%s4501_s12] sm:$0x7] }
 0x803   : > { %v2496_v27 = vrot.slane %v2490_v1, 1  ;;  %v2499_v56 = vrot.slane %v2490_v1, 2 }
 0x805   : > { %3623 = vmatpush3.bf16.msra.mxu0 %v3622_v45 }
 0x8b3   : > { %v2323_v46 = vpop.f32.mrb[20].mxu1 }
 0x8b4   : > { %v3322_v47 = vpop.f32.mrb[21].mxu1 }
 0x8b7   : > { %v2253_v48 = vpop.f32.mrb[20].mxu0 }
 0x8b8   : > { %v2324_v49 = vadd.f32 %v2323_v46, %v2253_v48  ;;  %v3287_v50 = vpop.f32.mrb[21].mxu0 }
 0x8bb   : > { %v2398_v51 = vpop.f32.mrb[22].mxu0 }
 0x8bc   : > { %3361 = vmatmul.mubr.f32.vlgmr.msra.gmra.mrb[24].mxu0 %v2398_v51  ;;  %v3327_v52 = vpop.f32.mrb[23].mxu0 }
 0x98f   : > { %v2485_v53 = vpop.f32.mrb[24].mxu0 }
 0x990   : > { %v2489_v54 = vadd.f32 %v2485_v53, %v2324_v49  ;;  %v3362_v20 = vpop.f32.mrb[25].mxu0 }
 0x992   : > { %v2491_v24 = vadd.f32 %v2490_v1, %v2489_v54 }
 0x994   : > { %vm2492_vm11 = vcmp.ge.f32.partialorder %v2491_v24, 0.0  ;;  %v2493_v55 = vmul.f32 0.2, %v2491_v24 }
 0x996   : > { %v2494_v57 = vsel %vm2492_vm11, %v2491_v24, %v2493_v55 }
 0x997   : > { %v2498_v58 = vmul.f32 %v2496_v27, %v2494_v57 }
 0x999   : > { %v2501_v60 = vadd.f32 %v2499_v56, %v2498_v58 }
 0x99b   : > { %v2503_v61 = vmul.f32 %v2502_v59, %v2501_v60 }
 0x99d   : > { %v2505_v62 = vsel %vm2504_vm12, %v2503_v61, 0.0 }
 0x99e   : > { %2506 = vadd.xlane.f32.xlu0 %v2505_v62 }
 0xa2b   : > { %v2507_v0 = vpop.xlane.xlu0 %2506 }
 0xa2c   : > { %v2510_v3 = vadd.f32 %v2509_v63, %v2507_v0 }
 0xa2e   : > { %v2714_v4 = vmul.f32 -1.442695, %v2510_v3 }
 0xa30   : > { %3635 = vpow2.f32 %v2714_v4 }
 0xa3a   : > { %v3636_v5 = vpop.eup %3635 }
 0xa3b   : > { %v2514_v6 = vadd.f32 1.0, %v3636_v5 }
 0xa3d   : > { %3637 = vrcp.f32 %v2514_v6 }
 0xa47   : > { %v3638_v7 = vpop.eup %3637 }
 0xa48   : > { %2518 = vst.msk [vmem:[%s492_s18] sm:$0x1] %vm2517_vm13, %v3638_v7 }
 0xa49 PF: > { %s27_s20 = sadd.s32 1, %s3645_s20  }
 0xa4a   : > { %p24_p4 = scmp.ge.s32.totalorder %s27_s20, 4  }
 0xa4c   :  { %26 = sbr.rel (!%p24_p4) target bundleno = 3 (0x3), region = 126 }

</bundles_post_ra>
